<compile_context>
chip_gen: v7x
topology: tpu7x:2x2x1
jax: 0.10.0
libtpu: 0.0.40
codegen_flags: <defaults>
</compile_context>

<pallas_src>
import jax
import jax.numpy as jnp
from jax.experimental import pallas as pl
from jax.experimental.pallas import tpu as pltpu

NZ = 100
NZ_PAD = 128                        # pad contraction dim of first matmul
IMAGE_SIZE = 28
OUT_DIM = IMAGE_SIZE * IMAGE_SIZE   # 784
OUT_PAD = 896                       # 7 * 128 -> lane-dense final matmul/store
HIDDENS = (128, 256, 512)
BN_EPS = 0.8                        # nn.BatchNorm1d(C, 0.8) -> eps = 0.8
LRELU_SLOPE = 0.25


def _generator_kernel(x_ref,
                      w1_ref, g1_ref, b1_ref,
                      w2_ref, g2_ref, b2_ref,
                      w3_ref, g3_ref, b3_ref,
                      w4_ref,
                      o_ref):
    """Fused Generator forward. All operands are resident in VMEM.

    Matmul inputs are bf16; accumulation and all elementwise/transcendental
    math is f32.
    """

    def bn_lrelu(h, gamma, beta):
        # Training-mode BatchNorm1d: batch mean + biased variance, eps = 0.8.
        # One-pass stats; safe because eps = 0.8 dominates any cancellation.
        mean = jnp.mean(h, axis=0, keepdims=True)
        mean_sq = jnp.mean(h * h, axis=0, keepdims=True)
        var = mean_sq - mean * mean
        # Fold BN affine into a single per-feature scale/shift: y = h*s + b.
        s = gamma * jax.lax.rsqrt(var + BN_EPS)
        b = beta - mean * s
        y = h * s + b
        y = jnp.where(y >= 0, y, LRELU_SLOPE * y)      # LeakyReLU(0.25)
        return y.astype(jnp.bfloat16)                  # bf16 LHS for next matmul

    h = jnp.dot(x_ref[...], w1_ref[...], preferred_element_type=jnp.float32)
    h = bn_lrelu(h, g1_ref[...], b1_ref[...])

    h = jnp.dot(h, w2_ref[...], preferred_element_type=jnp.float32)
    h = bn_lrelu(h, g2_ref[...], b2_ref[...])

    h = jnp.dot(h, w3_ref[...], preferred_element_type=jnp.float32)
    h = bn_lrelu(h, g3_ref[...], b3_ref[...])

    h = jnp.dot(h, w4_ref[...], preferred_element_type=jnp.float32)
    o_ref[...] = jnp.tanh(h)                           # (B, OUT_PAD) f32


def prepare_params(params):
    """Pre-pack parameters for the kernel: bf16 weights, padded w1 (K) and w4 (N)."""
    w1 = jnp.zeros((NZ_PAD, HIDDENS[0]), jnp.bfloat16)
    w1 = w1.at[:NZ, :].set(params["w1"].astype(jnp.bfloat16))
    w4 = jnp.zeros((HIDDENS[2], OUT_PAD), jnp.bfloat16)
    w4 = w4.at[:, :OUT_DIM].set(params["w4"].astype(jnp.bfloat16))
    return {
        "w1": w1,
        "w2": params["w2"].astype(jnp.bfloat16),
        "w3": params["w3"].astype(jnp.bfloat16),
        "w4": w4,
        "g1": params["g1"], "b1": params["b1"],
        "g2": params["g2"], "b2": params["b2"],
        "g3": params["g3"], "b3": params["b3"],
    }


def generator_forward(x, packed):
    """x: (B, NZ) f32. packed: output of prepare_params. Returns (B, 784) f32."""
    B = x.shape[0]
    # Zero-pad the latent dim 100 -> 128 (zeros contribute nothing to the matmul).
    x_p = jnp.zeros((B, NZ_PAD), jnp.bfloat16).at[:, :NZ].set(x.astype(jnp.bfloat16))

    operands = (
        x_p,
        packed["w1"], packed["g1"], packed["b1"],
        packed["w2"], packed["g2"], packed["b2"],
        packed["w3"], packed["g3"], packed["b3"],
        packed["w4"],
    )
    vmem_spec = pl.BlockSpec(memory_space=pltpu.MemorySpace.VMEM)
    out_padded = pl.pallas_call(
        _generator_kernel,
        out_shape=jax.ShapeDtypeStruct((B, OUT_PAD), jnp.float32),
        in_specs=[vmem_spec] * len(operands),
        out_specs=vmem_spec,
        compiler_params=pltpu.CompilerParams(vmem_limit_bytes=8 << 20),
    )(*operands)
    return out_padded[:, :OUT_DIM]


def init_params(key):
    """Deterministic synthetic parameters matching the PyTorch module's shapes (f32)."""
    dims = (NZ,) + HIDDENS + (OUT_DIM,)  # 100 -> 128 -> 256 -> 512 -> 784
    keys = jax.random.split(key, 16)
    params = {}
    ki = 0
    for li in range(4):
        fan_in, fan_out = dims[li], dims[li + 1]
        # nn.Linear weight is (out, in); we store its transpose (in, out).
        w = jax.random.normal(keys[ki], (fan_in, fan_out), jnp.float32) * (1.0 / jnp.sqrt(fan_in))
        ki += 1
        params[f"w{li + 1}"] = w
        if li < 3:  # batchnorm affine params on the first three layers
            c = fan_out
            params[f"g{li + 1}"] = 1.0 + 0.1 * jax.random.normal(keys[ki], (1, c), jnp.float32)
            ki += 1
            params[f"b{li + 1}"] = 0.1 * jax.random.normal(keys[ki], (1, c), jnp.float32)
            ki += 1
    return params


def _reference_forward(x, params):
    """Pure-JAX reference mirroring PyTorch semantics (two-pass BN), with the
    same bf16 matmul-input casts as the kernel so the comparison is tight."""
    h = x.astype(jnp.bfloat16)
    for li in range(3):
        w = params[f"w{li + 1}"].astype(jnp.bfloat16)
        h = jnp.dot(h, w, preferred_element_type=jnp.float32)
        mean = jnp.mean(h, axis=0, keepdims=True)
        var = jnp.mean((h - mean) ** 2, axis=0, keepdims=True)
        h = (h - mean) / jnp.sqrt(var + BN_EPS)
        h = h * params[f"g{li + 1}"] + params[f"b{li + 1}"]
        h = jnp.where(h >= 0, h, LRELU_SLOPE * h).astype(jnp.bfloat16)
    w4 = params["w4"].astype(jnp.bfloat16)
    return jnp.tanh(jnp.dot(h, w4, preferred_element_type=jnp.float32))


if __name__ == "__main__":
    key = jax.random.PRNGKey(0)
    k_param, k_x = jax.random.split(key)

    B = 8  # small batch
    x = jax.random.normal(k_x, (B, NZ), jnp.float32)
    params = init_params(k_param)
    packed = prepare_params(params)

    out = generator_forward(x, packed)
    out = jax.block_until_ready(out)

    assert out.shape == (B, OUT_DIM), out.shape
    assert out.dtype == jnp.float32, out.dtype

    ref = _reference_forward(x, params)
    err = float(jnp.max(jnp.abs(out - ref)))
    assert err < 2e-2, f"mismatch vs reference: {err}"

    print("KERNEL_OK")
</pallas_src>

<mosaic_0001>
module attributes {stable_mosaic.version = 11 : i64} {
  func.func @_generator_kernel(%arg0: memref<8x128xbf16, #tpu.memory_space<vmem>>, %arg1: memref<128x128xbf16, #tpu.memory_space<vmem>>, %arg2: memref<1x128xf32, #tpu.memory_space<vmem>>, %arg3: memref<1x128xf32, #tpu.memory_space<vmem>>, %arg4: memref<128x256xbf16, #tpu.memory_space<vmem>>, %arg5: memref<1x256xf32, #tpu.memory_space<vmem>>, %arg6: memref<1x256xf32, #tpu.memory_space<vmem>>, %arg7: memref<256x512xbf16, #tpu.memory_space<vmem>>, %arg8: memref<1x512xf32, #tpu.memory_space<vmem>>, %arg9: memref<1x512xf32, #tpu.memory_space<vmem>>, %arg10: memref<512x896xbf16, #tpu.memory_space<vmem>>, %arg11: memref<8x896xf32, #tpu.memory_space<vmem>>) attributes {dimension_semantics = [], scalar_prefetch = 0 : i64, scratch_operands = 0 : i64, tpu.core_type = #tpu.core_type<tc>} {
    %c0 = arith.constant 0 : index
    %c0_0 = arith.constant 0 : index
    %0 = vector.load %arg0[%c0, %c0_0] : memref<8x128xbf16, #tpu.memory_space<vmem>>, vector<8x128xbf16>
    %c0_1 = arith.constant 0 : index
    %c0_2 = arith.constant 0 : index
    %1 = vector.load %arg1[%c0_1, %c0_2] : memref<128x128xbf16, #tpu.memory_space<vmem>>, vector<128x128xbf16>
    %cst = arith.constant dense<0.000000e+00> : vector<8x128xf32>
    %2 = tpu.matmul %0, %1, %cst {dimension_numbers = #tpu.dot_dimension_numbers<[1], [0], [0], [1], [0, 0, 1, 1], [], []>} : vector<8x128xbf16>, vector<128x128xbf16>, vector<8x128xf32> -> vector<8x128xf32>
    %c0_3 = arith.constant 0 : index
    %c0_4 = arith.constant 0 : index
    %3 = vector.load %arg2[%c0_3, %c0_4] : memref<1x128xf32, #tpu.memory_space<vmem>>, vector<1x128xf32>
    %c0_5 = arith.constant 0 : index
    %c0_6 = arith.constant 0 : index
    %4 = vector.load %arg3[%c0_5, %c0_6] : memref<1x128xf32, #tpu.memory_space<vmem>>, vector<1x128xf32>
    %cst_7 = arith.constant dense<0.000000e+00> : vector<128xf32>
    %5 = vector.multi_reduction <add>, %2, %cst_7 [0] : vector<8x128xf32> to vector<128xf32>
    %6 = vector.shape_cast %5 : vector<128xf32> to vector<1x128xf32>
    %cst_8 = arith.constant 8.000000e+00 : f32
    %7 = vector.broadcast %cst_8 : f32 to vector<1x128xf32>
    %8 = arith.divf %6, %7 : vector<1x128xf32>
    %9 = arith.mulf %2, %2 : vector<8x128xf32>
    %cst_9 = arith.constant dense<0.000000e+00> : vector<128xf32>
    %10 = vector.multi_reduction <add>, %9, %cst_9 [0] : vector<8x128xf32> to vector<128xf32>
    %11 = vector.shape_cast %10 : vector<128xf32> to vector<1x128xf32>
    %cst_10 = arith.constant 8.000000e+00 : f32
    %12 = vector.broadcast %cst_10 : f32 to vector<1x128xf32>
    %13 = arith.divf %11, %12 : vector<1x128xf32>
    %14 = arith.mulf %8, %8 : vector<1x128xf32>
    %15 = arith.subf %13, %14 : vector<1x128xf32>
    %cst_11 = arith.constant 8.000000e-01 : f32
    %16 = vector.broadcast %cst_11 : f32 to vector<1x128xf32>
    %17 = arith.addf %15, %16 : vector<1x128xf32>
    %18 = math.rsqrt %17 : vector<1x128xf32>
    %19 = arith.mulf %3, %18 : vector<1x128xf32>
    %20 = arith.mulf %8, %19 : vector<1x128xf32>
    %21 = arith.subf %4, %20 : vector<1x128xf32>
    %22 = vector.broadcast %19 : vector<1x128xf32> to vector<8x128xf32>
    %23 = arith.mulf %2, %22 : vector<8x128xf32>
    %24 = vector.broadcast %21 : vector<1x128xf32> to vector<8x128xf32>
    %25 = arith.addf %23, %24 : vector<8x128xf32>
    %cst_12 = arith.constant 0.000000e+00 : f32
    %26 = vector.broadcast %cst_12 : f32 to vector<8x128xf32>
    %27 = arith.cmpf oge, %25, %26 : vector<8x128xf32>
    %cst_13 = arith.constant 2.500000e-01 : f32
    %28 = vector.broadcast %cst_13 : f32 to vector<8x128xf32>
    %29 = arith.mulf %28, %25 : vector<8x128xf32>
    %30 = arith.select %27, %25, %29 : vector<8x128xi1>, vector<8x128xf32>
    %31 = arith.truncf %30 : vector<8x128xf32> to vector<8x128xbf16>
    %c0_14 = arith.constant 0 : index
    %c0_15 = arith.constant 0 : index
    %32 = vector.load %arg4[%c0_14, %c0_15] : memref<128x256xbf16, #tpu.memory_space<vmem>>, vector<128x256xbf16>
    %cst_16 = arith.constant dense<0.000000e+00> : vector<8x256xf32>
    %33 = tpu.matmul %31, %32, %cst_16 {dimension_numbers = #tpu.dot_dimension_numbers<[1], [0], [0], [1], [0, 0, 1, 1], [], []>} : vector<8x128xbf16>, vector<128x256xbf16>, vector<8x256xf32> -> vector<8x256xf32>
    %c0_17 = arith.constant 0 : index
    %c0_18 = arith.constant 0 : index
    %34 = vector.load %arg5[%c0_17, %c0_18] : memref<1x256xf32, #tpu.memory_space<vmem>>, vector<1x256xf32>
    %c0_19 = arith.constant 0 : index
    %c0_20 = arith.constant 0 : index
    %35 = vector.load %arg6[%c0_19, %c0_20] : memref<1x256xf32, #tpu.memory_space<vmem>>, vector<1x256xf32>
    %cst_21 = arith.constant dense<0.000000e+00> : vector<256xf32>
    %36 = vector.multi_reduction <add>, %33, %cst_21 [0] : vector<8x256xf32> to vector<256xf32>
    %37 = vector.shape_cast %36 : vector<256xf32> to vector<1x256xf32>
    %cst_22 = arith.constant 8.000000e+00 : f32
    %38 = vector.broadcast %cst_22 : f32 to vector<1x256xf32>
    %39 = arith.divf %37, %38 : vector<1x256xf32>
    %40 = arith.mulf %33, %33 : vector<8x256xf32>
    %cst_23 = arith.constant dense<0.000000e+00> : vector<256xf32>
    %41 = vector.multi_reduction <add>, %40, %cst_23 [0] : vector<8x256xf32> to vector<256xf32>
    %42 = vector.shape_cast %41 : vector<256xf32> to vector<1x256xf32>
    %cst_24 = arith.constant 8.000000e+00 : f32
    %43 = vector.broadcast %cst_24 : f32 to vector<1x256xf32>
    %44 = arith.divf %42, %43 : vector<1x256xf32>
    %45 = arith.mulf %39, %39 : vector<1x256xf32>
    %46 = arith.subf %44, %45 : vector<1x256xf32>
    %cst_25 = arith.constant 8.000000e-01 : f32
    %47 = vector.broadcast %cst_25 : f32 to vector<1x256xf32>
    %48 = arith.addf %46, %47 : vector<1x256xf32>
    %49 = math.rsqrt %48 : vector<1x256xf32>
    %50 = arith.mulf %34, %49 : vector<1x256xf32>
    %51 = arith.mulf %39, %50 : vector<1x256xf32>
    %52 = arith.subf %35, %51 : vector<1x256xf32>
    %53 = vector.broadcast %50 : vector<1x256xf32> to vector<8x256xf32>
    %54 = arith.mulf %33, %53 : vector<8x256xf32>
    %55 = vector.broadcast %52 : vector<1x256xf32> to vector<8x256xf32>
    %56 = arith.addf %54, %55 : vector<8x256xf32>
    %cst_26 = arith.constant 0.000000e+00 : f32
    %57 = vector.broadcast %cst_26 : f32 to vector<8x256xf32>
    %58 = arith.cmpf oge, %56, %57 : vector<8x256xf32>
    %cst_27 = arith.constant 2.500000e-01 : f32
    %59 = vector.broadcast %cst_27 : f32 to vector<8x256xf32>
    %60 = arith.mulf %59, %56 : vector<8x256xf32>
    %61 = arith.select %58, %56, %60 : vector<8x256xi1>, vector<8x256xf32>
    %62 = arith.truncf %61 : vector<8x256xf32> to vector<8x256xbf16>
    %c0_28 = arith.constant 0 : index
    %c0_29 = arith.constant 0 : index
    %63 = vector.load %arg7[%c0_28, %c0_29] : memref<256x512xbf16, #tpu.memory_space<vmem>>, vector<256x512xbf16>
    %cst_30 = arith.constant dense<0.000000e+00> : vector<8x512xf32>
    %64 = tpu.matmul %62, %63, %cst_30 {dimension_numbers = #tpu.dot_dimension_numbers<[1], [0], [0], [1], [0, 0, 1, 1], [], []>} : vector<8x256xbf16>, vector<256x512xbf16>, vector<8x512xf32> -> vector<8x512xf32>
    %c0_31 = arith.constant 0 : index
    %c0_32 = arith.constant 0 : index
    %65 = vector.load %arg8[%c0_31, %c0_32] : memref<1x512xf32, #tpu.memory_space<vmem>>, vector<1x512xf32>
    %c0_33 = arith.constant 0 : index
    %c0_34 = arith.constant 0 : index
    %66 = vector.load %arg9[%c0_33, %c0_34] : memref<1x512xf32, #tpu.memory_space<vmem>>, vector<1x512xf32>
    %cst_35 = arith.constant dense<0.000000e+00> : vector<512xf32>
    %67 = vector.multi_reduction <add>, %64, %cst_35 [0] : vector<8x512xf32> to vector<512xf32>
    %68 = vector.shape_cast %67 : vector<512xf32> to vector<1x512xf32>
    %cst_36 = arith.constant 8.000000e+00 : f32
    %69 = vector.broadcast %cst_36 : f32 to vector<1x512xf32>
    %70 = arith.divf %68, %69 : vector<1x512xf32>
    %71 = arith.mulf %64, %64 : vector<8x512xf32>
    %cst_37 = arith.constant dense<0.000000e+00> : vector<512xf32>
    %72 = vector.multi_reduction <add>, %71, %cst_37 [0] : vector<8x512xf32> to vector<512xf32>
    %73 = vector.shape_cast %72 : vector<512xf32> to vector<1x512xf32>
    %cst_38 = arith.constant 8.000000e+00 : f32
    %74 = vector.broadcast %cst_38 : f32 to vector<1x512xf32>
    %75 = arith.divf %73, %74 : vector<1x512xf32>
    %76 = arith.mulf %70, %70 : vector<1x512xf32>
    %77 = arith.subf %75, %76 : vector<1x512xf32>
    %cst_39 = arith.constant 8.000000e-01 : f32
    %78 = vector.broadcast %cst_39 : f32 to vector<1x512xf32>
    %79 = arith.addf %77, %78 : vector<1x512xf32>
    %80 = math.rsqrt %79 : vector<1x512xf32>
    %81 = arith.mulf %65, %80 : vector<1x512xf32>
    %82 = arith.mulf %70, %81 : vector<1x512xf32>
    %83 = arith.subf %66, %82 : vector<1x512xf32>
    %84 = vector.broadcast %81 : vector<1x512xf32> to vector<8x512xf32>
    %85 = arith.mulf %64, %84 : vector<8x512xf32>
    %86 = vector.broadcast %83 : vector<1x512xf32> to vector<8x512xf32>
    %87 = arith.addf %85, %86 : vector<8x512xf32>
    %cst_40 = arith.constant 0.000000e+00 : f32
    %88 = vector.broadcast %cst_40 : f32 to vector<8x512xf32>
    %89 = arith.cmpf oge, %87, %88 : vector<8x512xf32>
    %cst_41 = arith.constant 2.500000e-01 : f32
    %90 = vector.broadcast %cst_41 : f32 to vector<8x512xf32>
    %91 = arith.mulf %90, %87 : vector<8x512xf32>
    %92 = arith.select %89, %87, %91 : vector<8x512xi1>, vector<8x512xf32>
    %93 = arith.truncf %92 : vector<8x512xf32> to vector<8x512xbf16>
    %c0_42 = arith.constant 0 : index
    %c0_43 = arith.constant 0 : index
    %94 = vector.load %arg10[%c0_42, %c0_43] : memref<512x896xbf16, #tpu.memory_space<vmem>>, vector<512x896xbf16>
    %cst_44 = arith.constant dense<0.000000e+00> : vector<8x896xf32>
    %95 = tpu.matmul %93, %94, %cst_44 {dimension_numbers = #tpu.dot_dimension_numbers<[1], [0], [0], [1], [0, 0, 1, 1], [], []>} : vector<8x512xbf16>, vector<512x896xbf16>, vector<8x896xf32> -> vector<8x896xf32>
    %96 = math.tanh %95 : vector<8x896xf32>
    %c0_45 = arith.constant 0 : index
    %c0_46 = arith.constant 0 : index
    %97 = vector.load %arg11[%c0_45, %c0_46] : memref<8x896xf32, #tpu.memory_space<vmem>>, vector<8x896xf32>
    tpu.vector_store %arg11[%c0_45, %c0_46], %96 {strides = array<i32>} : memref<8x896xf32, #tpu.memory_space<vmem>>, vector<8x896xf32>,
    return
  }
}

</mosaic_0001>

<bundles_post_ra>
// kernel: tpu_custom_call.1
= control target key start
LH: loop header
LB: loop body
LE: loop exit
PB: predicated region body
PF: predicated region fallthrough
CT: control target
= control target key end

     0   :  { %16 = vsyncpa [#allocation3], 0  ;;  %s4281_s0 = inlined_call_operand.hbm [shape: bf16[8,128], index: 0, kind: input, shape index: {}]   ;;  %s4282_s1 = inlined_call_operand.hbm [shape: bf16[128,128], index: 1, kind: input, shape index: {}]   ;;  %s4283_s2 = inlined_call_operand.vmem [shape: f32[1,128], index: 2, kind: input, shape index: {}]   ;;  %s4284_s3 = inlined_call_operand.hbm [shape: f32[1,128], index: 3, kind: input, shape index: {}]   ;;  %s4285_s4 = inlined_call_operand.hbm [shape: bf16[128,256], index: 4, kind: input, shape index: {}]   ;;  %s4286_s5 = inlined_call_operand.vmem [shape: f32[1,256], index: 5, kind: input, shape index: {}]   ;;  %s4287_s6 = inlined_call_operand.vmem [shape: f32[1,256], index: 6, kind: input, shape index: {}]   ;;  %s4288_s7 = inlined_call_operand.hbm [shape: bf16[256,512], index: 7, kind: input, shape index: {}]   ;;  %s4289_s8 = inlined_call_operand.vmem [shape: f32[1,512], index: 8, kind: input, shape index: {}]   ;;  %s4290_s9 = inlined_call_operand.vmem [shape: f32[1,512], index: 9, kind: input, shape index: {}]   ;;  %s4291_s10 = inlined_call_operand.hbm [shape: bf16[512,896], index: 10, kind: input, shape index: {}]   ;;  %s4292_s11 = inlined_call_operand.hbm [shape: f32[8,896], index: 11, kind: output, shape index: {}]  }
   0x1   :  { %17 = vsyncpa [#allocation6], 0 }
   0x2   :  { %18 = vsyncpa [#allocation9], 0 }
   0x3   :  { %19 = vsyncpa [#allocation12], 0 }
   0x4   :  { %20 = vsyncpa [#allocation4], 0  ;;  %s4013_s17 = smov [#allocation5]   ;;  %s3849_s21 = scalar_lea.hbm %s4282_s1, 1024 }
   0x5   :  { %s36_s18 = sshll.u32 %s4013_s17, 4  ;;  %p3850_p0 = scmp.ne.s32.totalorder %s4282_s1, %s3849_s21  ;;  %s37_s18 = int_to_ptr.vmem [resolvable:$true] %s36_s18 }
   0x6   :  { %p3853_p1 = scmp.lt.u32.totalorder %s3849_s21, %s4282_s1 }
   0x8   :  { %p3855_p2 = pnand %p3853_p1, %p3850_p0 }
   0xa   :  { %3858 = shalt.err (!%p3855_p2)
}
   0xb   :  { %s3859_s26 = scalar_lea.vmem %s37_s18, 1024  ;;  %p3864_p4 = scmp.lt.s32.totalorder %s37_s18, %s37_s18 }
   0xc   :  { %p3860_p3 = scmp.ne.s32.totalorder %s37_s18, %s3859_s26  ;;  %p3865_p5 = scmp.lt.s32.totalorder %s3859_s26, %s3859_s26 }
   0xe   :  { %p3866_p6 = por %p3865_p5, %p3864_p4 }
  0x10   :  { %p3867_p7 = pnand %p3866_p6, %p3860_p3 }
  0x12   :  { %3870 = shalt.err (!%p3867_p7)
}
  0x13   :  { %s4014_s27 = smov 64   ;;  %s4015_s28 = smov 4  }
  0x14   :  { %42 = dma.hbm_to_vmem [thread:$0]  %s4282_s1, 1024, %s37_s18, [#allocation6], %s4014_s27, %s4014_s27, %s4015_s28  }
  0x15   :  { %s4016_s12 = smov [#allocation8]   ;;  %s3871_s16 = scalar_lea.hbm %s4285_s4, 2048 }
  0x16   :  { %s60_s13 = sshll.u32 %s4016_s12, 4  ;;  %p3872_p8 = scmp.ne.s32.totalorder %s4285_s4, %s3871_s16  ;;  %s61_s13 = int_to_ptr.vmem [resolvable:$true] %s60_s13 }
  0x17   :  { %p3875_p9 = scmp.lt.u32.totalorder %s3871_s16, %s4285_s4 }
  0x19   :  { %p3877_p10 = pnand %p3875_p9, %p3872_p8 }
  0x1b   :  { %3880 = shalt.err (!%p3877_p10)
}
  0x1c   :  { %s3881_s22 = scalar_lea.vmem %s61_s13, 2048  ;;  %p3886_p12 = scmp.lt.s32.totalorder %s61_s13, %s61_s13 }
  0x1d   :  { %p3882_p11 = scmp.ne.s32.totalorder %s61_s13, %s3881_s22  ;;  %p3887_p13 = scmp.lt.s32.totalorder %s3881_s22, %s3881_s22 }
  0x1f   :  { %p3888_p0 = por %p3887_p13, %p3886_p12 }
  0x21   :  { %p3889_p1 = pnand %p3888_p0, %p3882_p11 }
  0x23   :  { %3892 = shalt.err (!%p3889_p1)
}
  0x24   :  { %s4017_s1 = smov 128   ;;  %s4018_s18 = smov 8  }
  0x25   :  { %66 = dma.hbm_to_vmem [thread:$0]  %s4285_s4, 2048, %s61_s13, [#allocation9], %s4017_s1, %s4017_s1, %s4018_s18  }
  0x26   :  { %s4019_s25 = smov [#allocation2]   ;;  %s4020_s27 = smov [#allocation7]  }
  0x27   :  { %s27_s26 = sshll.u32 %s4019_s25, 4  ;;  %s51_s28 = sshll.u32 %s4020_s27, 4  ;;  %s28_s26 = int_to_ptr.vmem [resolvable:$true] %s27_s26  ;;  %s52_s28 = int_to_ptr.vmem [resolvable:$true] %s51_s28 }
  0x28   :  { %s3893_s12 = scalar_lea.hbm %s4281_s0, 64 }
  0x29   :  { %p3894_p2 = scmp.ne.s32.totalorder %s4281_s0, %s3893_s12  ;;  %p3897_p3 = scmp.lt.u32.totalorder %s3893_s12, %s4281_s0 }
  0x2b   :  { %p3899_p4 = pnand %p3897_p3, %p3894_p2 }
  0x2d   :  { %3902 = shalt.err (!%p3899_p4)
}
  0x2e   :  { %s3903_s4 = scalar_lea.vmem %s28_s26, 64  ;;  %p3908_p6 = scmp.lt.s32.totalorder %s28_s26, %s28_s26 }
  0x2f   :  { %p3904_p5 = scmp.ne.s32.totalorder %s28_s26, %s3903_s4  ;;  %p3909_p7 = scmp.lt.s32.totalorder %s3903_s4, %s3903_s4 }
  0x31   :  { %p3910_p8 = por %p3909_p7, %p3908_p6 }
  0x33   :  { %p3911_p9 = pnand %p3910_p8, %p3904_p5 }
  0x35   :  { %3914 = shalt.err (!%p3911_p9)
}
  0x36   :  { %30 = dma.hbm_to_vmem [thread:$0]  %s4281_s0, 64, %s28_s26, [#allocation3]  }
  0x37   :  { %s3915_s22 = scalar_lea.hbm %s4284_s3, 16 }
  0x38   :  { %p3916_p10 = scmp.ne.s32.totalorder %s4284_s3, %s3915_s22  ;;  %p3919_p11 = scmp.lt.u32.totalorder %s3915_s22, %s4284_s3 }
  0x3a   :  { %p3921_p12 = pnand %p3919_p11, %p3916_p10 }
  0x3c   :  { %3924 = shalt.err (!%p3921_p12)
}
  0x3d   :  { %s3925_s25 = scalar_lea.vmem %s52_s28, 16  ;;  %s3929_s27 = scalar_lea.vmem %s52_s28, 32 }
  0x3e   :  { %p3926_p13 = scmp.ne.s32.totalorder %s52_s28, %s3925_s25  ;;  %p3930_p0 = scmp.lt.s32.totalorder %s52_s28, %s52_s28 }
  0x3f   :  { %p3931_p1 = scmp.lt.s32.totalorder %s3929_s27, %s3925_s25 }
  0x41   :  { %p3932_p2 = por %p3931_p1, %p3930_p0 }
  0x43   :  { %p3933_p3 = pnand %p3932_p2, %p3926_p13 }
  0x45   :  { %3936 = shalt.err (!%p3933_p3)
}
  0x46   :  { %54 = dma.hbm_to_vmem [thread:$0]  %s4284_s3, 16, %s52_s28, [#allocation6]  }
  0x47   :  { %s4021_s29 = smov [#allocation10]   ;;  %s3937_s15 = scalar_lea.hbm %s4288_s7, 8192 }
  0x48   :  { %s76_s30 = sshll.u32 %s4021_s29, 4  ;;  %p3938_p4 = scmp.ne.s32.totalorder %s4288_s7, %s3937_s15  ;;  %s77_s30 = int_to_ptr.vmem [resolvable:$true] %s76_s30 }
  0x49   :  { %p3941_p5 = scmp.lt.u32.totalorder %s3937_s15, %s4288_s7 }
  0x4b   :  { %p3943_p6 = pnand %p3941_p5, %p3938_p4 }
  0x4d   :  { %3946 = shalt.err (!%p3943_p6)
}
  0x4e   :  { %s3947_s19 = scalar_lea.vmem %s77_s30, 8192  ;;  %p3952_p8 = scmp.lt.s32.totalorder %s77_s30, %s77_s30 }
  0x4f   :  { %p3948_p7 = scmp.ne.s32.totalorder %s77_s30, %s3947_s19  ;;  %p3953_p9 = scmp.lt.s32.totalorder %s3947_s19, %s3947_s19 }
  0x51   :  { %p3954_p10 = por %p3953_p9, %p3952_p8 }
  0x53   :  { %p3955_p11 = pnand %p3954_p10, %p3948_p7 }
  0x55   :  { %3958 = shalt.err (!%p3955_p11)
}
  0x56   :  { %s4022_s3 = smov 256   ;;  %s4023_s28 = smov 16  }
  0x57   :  { %82 = dma.hbm_to_vmem [thread:$0]  %s4288_s7, 8192, %s77_s30, [#allocation9], %s4022_s3, %s4022_s3, %s4023_s28  }
  0x58   :  { %s4024_s22 = smov [#allocation11]   ;;  %s3959_s24 = scalar_lea.hbm %s4291_s10, 28672 }
  0x59   :  { %s92_s1 = sshll.u32 %s4024_s22, 4  ;;  %p3960_p12 = scmp.ne.s32.totalorder %s4291_s10, %s3959_s24  ;;  %s93_s1 = int_to_ptr.vmem [resolvable:$true] %s92_s1 }
  0x5a   :  { %p3963_p13 = scmp.lt.u32.totalorder %s3959_s24, %s4291_s10 }
  0x5c   :  { %p3965_p0 = pnand %p3963_p13, %p3960_p12 }
  0x5e   :  { %3968 = shalt.err (!%p3965_p0)
}
  0x5f   :  { %s3969_s29 = scalar_lea.vmem %s93_s1, 28672  ;;  %p3974_p2 = scmp.lt.s32.totalorder %s93_s1, %s93_s1 }
  0x60   :  { %p3970_p1 = scmp.ne.s32.totalorder %s93_s1, %s3969_s29  ;;  %p3975_p3 = scmp.lt.s32.totalorder %s3969_s29, %s3969_s29 }
  0x62   :  { %p3976_p4 = por %p3975_p3, %p3974_p2 }
  0x64   :  { %p3977_p5 = pnand %p3976_p4, %p3970_p1 }
  0x66   :  { %3980 = shalt.err (!%p3977_p5)
}
  0x67   :  { %s4025_s7 = smov 448   ;;  %s4026_s30 = smov 28  }
  0x68   :  { %98 = dma.hbm_to_vmem [thread:$0]  %s4291_s10, 28672, %s93_s1, [#allocation12], %s4025_s7, %s4025_s7, %s4026_s30  }
  0x69   :  { %4003 = dma.done.wait [#allocation3], 64  }
  0x6a   :  { %4004 = vsyncadd [#allocation3], 4294967232 }
  0x6b   :  { %4005 = dma.done.wait [#allocation6], 1040  }
  0x6c   :  { %4006 = vsyncadd [#allocation6], 4294966256 }
  0x6d   :  { %4007 = dma.done.wait [#allocation9], 10240  }
  0x6e   :  { %4008 = vsyncadd [#allocation9], 4294957056 }
  0x6f   :  { %4009 = dma.done.wait [#allocation12], 28672  }
  0x70   :  { %4010 = vsyncadd [#allocation12], 4294938624  ;;  %v4027_v0 = vmov 0.0   ;;  %vm4028_vm0 = vmmov 0   ;;  %v3373_v1 = vld [vmem:[#allocation5] sm:$0xff]   ;;  %v3374_v2 = vld [vmem:[#allocation5 + $0x8] sm:$0xff]   ;;  %v249_v51 = vlaneseq }
  0x71   :  { %3322 = vmatprep.subr.bf16.mxu1 %v4027_v0  ;;  %3338 = vmatprep.mubr.msk.bf16.mxu1 %vm4028_vm0, %v4027_v0  ;;  %v3375_v3 = vld [vmem:[#allocation5 + $0x10] sm:$0xff]   ;;  %v3376_v4 = vld [vmem:[#allocation5 + $0x18] sm:$0xff]   ;;  %v3377_v5 = vld [vmem:[#allocation5 + $0x20] sm:$0xff]   ;;  %v4029_v26 = vmov 0  }
  0x72   :  { %3323 = vmatpush3.bf16.msra.mxu1 %v3373_v1  ;;  %v3378_v6 = vld [vmem:[#allocation5 + $0x28] sm:$0xff]   ;;  %v3379_v7 = vld [vmem:[#allocation5 + $0x30] sm:$0xff]   ;;  %v3380_v8 = vld [vmem:[#allocation5 + $0x38] sm:$0xff]   ;;  %v4164_v52 = vshrl.u32 %v249_v51, 7 }
  0x73   :  { %3324 = vmatprep.subr.bf16.mxu1 %v4027_v0  ;;  %v118_v9 = vld [vmem:[#allocation2] sm:$0xf]  ;;  %v3383_v10 = vld [vmem:[#allocation8 + $0x4] ss:$8 sps:$4 sm:$0xff]   ;;  %v3381_v11 = vld [vmem:[#allocation8] ss:$8 sps:$4 sm:$0xff]  }
  0x74   :  { %v3386_v12 = vld [vmem:[#allocation8 + $0x14] ss:$8 sps:$4 sm:$0xff]   ;;  %v3384_v13 = vld [vmem:[#allocation8 + $0x10] ss:$8 sps:$4 sm:$0xff]   ;;  %v3389_v14 = vld [vmem:[#allocation8 + $0x24] ss:$8 sps:$4 sm:$0xff]  }
  0x75   :  { %v3387_v15 = vld [vmem:[#allocation8 + $0x20] ss:$8 sps:$4 sm:$0xff]   ;;  %v3392_v16 = vld [vmem:[#allocation8 + $0x34] ss:$8 sps:$4 sm:$0xff]   ;;  %v3390_v17 = vld [vmem:[#allocation8 + $0x30] ss:$8 sps:$4 sm:$0xff]  }
  0x76   :  { %3325 = vmatpush3.bf16.msra.mxu1 %v3374_v2  ;;  %v3395_v18 = vld [vmem:[#allocation8 + $0x44] ss:$8 sps:$4 sm:$0xff]   ;;  %v3393_v19 = vld [vmem:[#allocation8 + $0x40] ss:$8 sps:$4 sm:$0xff]   ;;  %v3398_v20 = vld [vmem:[#allocation8 + $0x54] ss:$8 sps:$4 sm:$0xff]  }
  0x77   :  { %3326 = vmatprep.subr.bf16.mxu1 %v4027_v0  ;;  %v3396_v21 = vld [vmem:[#allocation8 + $0x50] ss:$8 sps:$4 sm:$0xff]   ;;  %v3401_v22 = vld [vmem:[#allocation8 + $0x64] ss:$8 sps:$4 sm:$0xff]   ;;  %v3399_v23 = vld [vmem:[#allocation8 + $0x60] ss:$8 sps:$4 sm:$0xff]  }
  0x78   :  { %v3402_v24 = vld [vmem:[#allocation8 + $0x70] ss:$8 sps:$4 sm:$0xff]   ;;  %v3404_v25 = vld [vmem:[#allocation8 + $0x74] ss:$8 sps:$4 sm:$0xff]   ;;  %v4170_v54 = vsub.s32 0, %v4164_v52 }
  0x79   :  { %v3405_v27 = vld [vmem:[#allocation10 + $0x4] ss:$16 sps:$4 sm:$0xff]   ;;  %v3409_v28 = vld [vmem:[#allocation10 + $0xc] ss:$16 sps:$4 sm:$0xff]   ;;  %v223_v53 = vld [vmem:[%s4283_s2] sm:$0x1] }
  0x7a   :  { %3327 = vmatpush3.bf16.msra.mxu1 %v3375_v3  ;;  %901 = vmatprep.subr.bf16.mxu0 %v3405_v27  ;;  %v224_v57 = vld [vmem:[#allocation7] sm:$0x1]  ;;  %v3407_v2 = vld [vmem:[#allocation10 + $0x8] ss:$16 sps:$4 sm:$0xff]  }
  0x7b   :  { %3328 = vmatprep.subr.bf16.mxu1 %v4027_v0  ;;  %v3443_v27 = vld [vmem:[#allocation10 + $0xc8] ss:$16 sps:$4 sm:$0xff]  }
  0x7c   :  { %v3479_v51 = vld [vmem:[#allocation10 + $0x188] ss:$16 sps:$4 sm:$0xff]  }
  0x7e   :  { %3329 = vmatpush3.bf16.msra.mxu1 %v3376_v4  ;;  %v3410_v4 = vld [vmem:[#allocation10] ss:$16 sps:$4 sm:$0xff]  }
  0x7f   :  { %3330 = vmatprep.subr.bf16.mxu1 %v4027_v0  ;;  %902 = vmatpush1.bf16.msra.mxu0 %v3410_v4 }
  0x82   :  { %3331 = vmatpush3.bf16.msra.mxu1 %v3377_v5  ;;  %v3411_v5 = vld [vmem:[#allocation10 + $0x24] ss:$16 sps:$4 sm:$0xff]  }
  0x83   :  { %3332 = vmatprep.subr.bf16.mxu1 %v4027_v0  ;;  %903 = vmatprep.subr.bf16.mxu0 %v3411_v5 }
  0x86   :  { %3333 = vmatpush3.bf16.msra.mxu1 %v3378_v6  ;;  %v3415_v6 = vld [vmem:[#allocation10 + $0x2c] ss:$16 sps:$4 sm:$0xff]  }
  0x87   :  { %3334 = vmatprep.subr.bf16.mxu1 %v4027_v0 }
  0x8a   :  { %3335 = vmatpush3.bf16.msra.mxu1 %v3379_v7  ;;  %v3413_v7 = vld [vmem:[#allocation10 + $0x28] ss:$16 sps:$4 sm:$0xff]  }
  0x8b   :  { %3336 = vmatprep.subr.bf16.mxu1 %v4027_v0 }
  0x8e   :  { %3337 = vmatpush3.bf16.msra.mxu1 %v3380_v8  ;;  %v3416_v8 = vld [vmem:[#allocation10 + $0x20] ss:$16 sps:$4 sm:$0xff]  }
  0x8f   :  { %362 = vmatprep.subr.bf16.mxu1 %v3383_v10  ;;  %904 = vmatpush1.bf16.msra.mxu0 %v3416_v8  ;;  %v3421_v10 = vld [vmem:[#allocation10 + $0x4c] ss:$16 sps:$4 sm:$0xff]  }
  0x91   :  { %3339 = vmatmul.mubr.bf16.vlgmr.msra.gmra.mrb[0].mxu1 %v118_v9  ;;  %v3417_v9 = vld [vmem:[#allocation10 + $0x44] ss:$16 sps:$4 sm:$0xff]  }
  0x92   :  { %363 = vmatpush1.bf16.msra.mxu1 %v3381_v11  ;;  %394 = vmatprep.mubr.bf16.mxu1 %v4029_v26  ;;  %v3419_v11 = vld [vmem:[#allocation10 + $0x48] ss:$16 sps:$4 sm:$0xff]   ;;  %v3445_v26 = vld [vmem:[#allocation10 + $0xcc] ss:$16 sps:$4 sm:$0xff]  }
  0x93   :  { %364 = vmatprep.subr.bf16.mxu1 %v3386_v12  ;;  %v3422_v12 = vld [vmem:[#allocation10 + $0x40] ss:$16 sps:$4 sm:$0xff]   ;;  %905 = vmatprep.subr.bf16.mxu0 %v3417_v9 }
  0x94   :  { %906 = vmatpush1.bf16.msra.mxu0 %v3422_v12 }
  0x96   :  { %365 = vmatpush1.bf16.msra.mxu1 %v3384_v13  ;;  %v3423_v13 = vld [vmem:[#allocation10 + $0x64] ss:$16 sps:$4 sm:$0xff]  }
  0x97   :  { %366 = vmatprep.subr.bf16.mxu1 %v3389_v14  ;;  %v3427_v14 = vld [vmem:[#allocation10 + $0x6c] ss:$16 sps:$4 sm:$0xff]   ;;  %907 = vmatprep.subr.bf16.mxu0 %v3423_v13 }
  0x9a   :  { %367 = vmatpush1.bf16.msra.mxu1 %v3387_v15  ;;  %v3425_v15 = vld [vmem:[#allocation10 + $0x68] ss:$16 sps:$4 sm:$0xff]  }
  0x9b   :  { %368 = vmatprep.subr.bf16.mxu1 %v3392_v16  ;;  %v3428_v16 = vld [vmem:[#allocation10 + $0x60] ss:$16 sps:$4 sm:$0xff]  }
  0x9c   :  { %908 = vmatpush1.bf16.msra.mxu0 %v3428_v16 }
  0x9e   :  { %369 = vmatpush1.bf16.msra.mxu1 %v3390_v17  ;;  %v3429_v17 = vld [vmem:[#allocation10 + $0x84] ss:$16 sps:$4 sm:$0xff]  }
  0x9f   :  { %370 = vmatprep.subr.bf16.mxu1 %v3395_v18  ;;  %v3433_v18 = vld [vmem:[#allocation10 + $0x8c] ss:$16 sps:$4 sm:$0xff]   ;;  %909 = vmatprep.subr.bf16.mxu0 %v3429_v17 }
  0xa2   :  { %371 = vmatpush1.bf16.msra.mxu1 %v3393_v19  ;;  %v3431_v19 = vld [vmem:[#allocation10 + $0x88] ss:$16 sps:$4 sm:$0xff]  }
  0xa3   :  { %372 = vmatprep.subr.bf16.mxu1 %v3398_v20  ;;  %v3434_v20 = vld [vmem:[#allocation10 + $0x80] ss:$16 sps:$4 sm:$0xff]  }
  0xa4   :  { %910 = vmatpush1.bf16.msra.mxu0 %v3434_v20 }
  0xa6   :  { %373 = vmatpush1.bf16.msra.mxu1 %v3396_v21  ;;  %v3435_v21 = vld [vmem:[#allocation10 + $0xa4] ss:$16 sps:$4 sm:$0xff]  }
  0xa7   :  { %374 = vmatprep.subr.bf16.mxu1 %v3401_v22  ;;  %v3439_v22 = vld [vmem:[#allocation10 + $0xac] ss:$16 sps:$4 sm:$0xff]   ;;  %911 = vmatprep.subr.bf16.mxu0 %v3435_v21 }
  0xaa   :  { %375 = vmatpush1.bf16.msra.mxu1 %v3399_v23  ;;  %v3437_v23 = vld [vmem:[#allocation10 + $0xa8] ss:$16 sps:$4 sm:$0xff]  }
  0xab   :  { %376 = vmatprep.subr.bf16.mxu1 %v3404_v25  ;;  %v3441_v25 = vld [vmem:[#allocation10 + $0xc4] ss:$16 sps:$4 sm:$0xff]  }
  0xae   :  { %377 = vmatpush1.bf16.msra.mxu1 %v3402_v24  ;;  %v3440_v24 = vld [vmem:[#allocation10 + $0xa0] ss:$16 sps:$4 sm:$0xff]  }
  0xaf   :  { %942 = vmatprep.subr.bf16.mxu1 %v3409_v28  ;;  %912 = vmatpush1.bf16.msra.mxu0 %v3440_v24  ;;  %v3446_v28 = vld [vmem:[#allocation10 + $0xc0] ss:$16 sps:$4 sm:$0xff]  }
  0xb0   :  { %913 = vmatprep.subr.bf16.mxu0 %v3441_v25 }
  0xb3   :  { %914 = vmatpush1.bf16.msra.mxu0 %v3446_v28 }
 0x164   :  { %v217_v29 = vpop.f32.mrb[0].mxu1 }
 0x165   :  { %v225_v30 = vrot.slane %v217_v29, 4  ;;  %v233_v31 = vmul.f32 %v217_v29, %v217_v29  ;;  %v3340_v32 = vpop.f32.mrb[1].mxu1 }
 0x166   :  { %v220_v33 = vpop.f32.mrb[2].mxu1  ;;  %v3452_v32 = vld [vmem:[#allocation10 + $0xe0] ss:$16 sps:$4 sm:$0xff]  }
 0x167   :  { %v226_v34 = vadd.f32 %v225_v30, %v217_v29  ;;  %v234_v35 = vrot.slane %v233_v31, 4  ;;  %v3341_v36 = vpop.f32.mrb[3].mxu1  ;;  %v3451_v30 = vld [vmem:[#allocation10 + $0xec] ss:$16 sps:$4 sm:$0xff]   ;;  %v3453_v33 = vld [vmem:[#allocation10 + $0x104] ss:$16 sps:$4 sm:$0xff]  }
 0x168   :  { %v3458_v36 = vld [vmem:[#allocation10 + $0x100] ss:$16 sps:$4 sm:$0xff]  }
 0x169   :  { %v227_v37 = vrot.slane %v226_v34, 2  ;;  %v235_v38 = vadd.f32 %v234_v35, %v233_v31  ;;  %v3449_v31 = vld [vmem:[#allocation10 + $0xe8] ss:$16 sps:$4 sm:$0xff]  }
 0x16a   :  { %v3455_v35 = vld [vmem:[#allocation10 + $0x108] ss:$16 sps:$4 sm:$0xff]  }
 0x16b   :  { %v228_v39 = vadd.f32 %v227_v37, %v226_v34  ;;  %v236_v40 = vrot.slane %v235_v38, 2  ;;  %v3457_v34 = vld [vmem:[#allocation10 + $0x10c] ss:$16 sps:$4 sm:$0xff]   ;;  %v3459_v37 = vld [vmem:[#allocation10 + $0x124] ss:$16 sps:$4 sm:$0xff]  }
 0x16d   :  { %v229_v41 = vrot.slane %v228_v39, 1  ;;  %v237_v42 = vadd.f32 %v236_v40, %v235_v38  ;;  %v3463_v38 = vld [vmem:[#allocation10 + $0x12c] ss:$16 sps:$4 sm:$0xff]   ;;  %v3464_v40 = vld [vmem:[#allocation10 + $0x120] ss:$16 sps:$4 sm:$0xff]  }
 0x16f   :  { %v230_v43 = vadd.f32 %v229_v41, %v228_v39  ;;  %v238_v44 = vrot.slane %v237_v42, 1  ;;  %v3461_v39 = vld [vmem:[#allocation10 + $0x128] ss:$16 sps:$4 sm:$0xff]   ;;  %v3465_v41 = vld [vmem:[#allocation10 + $0x144] ss:$16 sps:$4 sm:$0xff]  }
 0x171   :  { %v232_v45 = vmul.f32 0.125, %v230_v43  ;;  %v239_v46 = vadd.f32 %v238_v44, %v237_v42  ;;  %v3469_v42 = vld [vmem:[#allocation10 + $0x14c] ss:$16 sps:$4 sm:$0xff]   ;;  %v3467_v43 = vld [vmem:[#allocation10 + $0x148] ss:$16 sps:$4 sm:$0xff]  }
 0x172   :  { %v3470_v44 = vld [vmem:[#allocation10 + $0x140] ss:$16 sps:$4 sm:$0xff]  }
 0x173   :  { %v240_v47 = vmul.f32 0.125, %v239_v46  ;;  %v241_v48 = vmul.f32 %v232_v45, %v232_v45  ;;  %v3475_v46 = vld [vmem:[#allocation10 + $0x16c] ss:$16 sps:$4 sm:$0xff]  }
 0x175   :  { %v242_v49 = vsub.f32 %v240_v47, %v241_v48  ;;  %v3473_v47 = vld [vmem:[#allocation10 + $0x168] ss:$16 sps:$4 sm:$0xff]   ;;  %v3476_v48 = vld [vmem:[#allocation10 + $0x160] ss:$16 sps:$4 sm:$0xff]  }
 0x177   :  { %v243_v50 = vadd.f32 0.8, %v242_v49  ;;  %v3477_v49 = vld [vmem:[#allocation10 + $0x184] ss:$16 sps:$4 sm:$0xff]  }
 0x179   :  { %3821 = vrsqrt.f32 %v243_v50  ;;  %v3481_v50 = vld [vmem:[#allocation10 + $0x18c] ss:$16 sps:$4 sm:$0xff]  }
 0x183   :  { %v3822_v55 = vpop.eup %3821 }
 0x184   :  { %v245_v56 = vmul.f32 %v3822_v55, %v223_v53  ;;  %v3482_v53 = vld [vmem:[#allocation10 + $0x180] ss:$16 sps:$4 sm:$0xff]   ;;  %v3483_v55 = vld [vmem:[#allocation10 + $0x1a4] ss:$16 sps:$4 sm:$0xff]  }
 0x186   :  { %v246_v58 = vmul.f32 %v245_v56, %v232_v45  ;;  %v252_v59 = vrot.slane %v245_v56, %v4170_v54  ;;  %v3471_v45 = vld [vmem:[#allocation10 + $0x164] ss:$16 sps:$4 sm:$0xff]   ;;  %v3487_v56 = vld [vmem:[#allocation10 + $0x1ac] ss:$16 sps:$4 sm:$0xff]  }
 0x188   :  { %v247_v60 = vsub.f32 %v224_v57, %v246_v58  ;;  %v254_v61 = vmul.f32 %v252_v59, %v217_v29  ;;  %v3447_v29 = vld [vmem:[#allocation10 + $0xe4] ss:$16 sps:$4 sm:$0xff]   ;;  %v3485_v57 = vld [vmem:[#allocation10 + $0x1a8] ss:$16 sps:$4 sm:$0xff]   ;;  %v3488_v58 = vld [vmem:[#allocation10 + $0x1a0] ss:$16 sps:$4 sm:$0xff]  }
 0x189   :  { %915 = vmatprep.subr.bf16.mxu0 %v3447_v29  ;;  %v3489_v59 = vld [vmem:[#allocation10 + $0x1c4] ss:$16 sps:$4 sm:$0xff]  }
 0x18a   :  { %v259_v62 = vrot.slane %v247_v60, %v4170_v54  ;;  %916 = vmatpush1.bf16.msra.mxu0 %v3452_v32  ;;  %v3493_v60 = vld [vmem:[#allocation10 + $0x1cc] ss:$16 sps:$4 sm:$0xff]  }
 0x18b   :  { %917 = vmatprep.subr.bf16.mxu0 %v3453_v33 }
 0x18c   :  { %v261_v63 = vadd.f32 %v259_v62, %v254_v61  ;;  %v3491_v61 = vld [vmem:[#allocation10 + $0x1c8] ss:$16 sps:$4 sm:$0xff]   ;;  %v3494_v62 = vld [vmem:[#allocation10 + $0x1c0] ss:$16 sps:$4 sm:$0xff]  }
 0x18e   :  { %vm262_vm1 = vcmp.ge.f32.partialorder %v261_v63, 0.0  ;;  %v263_v0 = vmul.f32 0.25, %v261_v63  ;;  %918 = vmatpush1.bf16.msra.mxu0 %v3458_v36 }
 0x18f   :  { %919 = vmatprep.subr.bf16.mxu0 %v3459_v37 }
 0x190   :  { %v264_v1 = vsel %vm262_vm1, %v261_v63, %v263_v0  ;;  %v3495_v63 = vld [vmem:[#allocation10 + $0x1e4] ss:$16 sps:$4 sm:$0xff]   ;;  %v3499_v0 = vld [vmem:[#allocation10 + $0x1ec] ss:$16 sps:$4 sm:$0xff]  }
 0x191   :  { %v265_v3 = vpack.c.bf16 %v264_v1, %v264_v1  ;;  %v3497_v1 = vld [vmem:[#allocation10 + $0x1e8] ss:$16 sps:$4 sm:$0xff]  }
 0x192   :  { %920 = vmatpush1.bf16.msra.mxu0 %v3464_v40 }
 0x193   :  { %395 = vmatmul.mubr.bf16.vlgmr.msra.gmra.mrb[4].mxu1 %v265_v3  ;;  %921 = vmatprep.subr.bf16.mxu0 %v3465_v41 }
 0x194   :  { %943 = vmatpush1.bf16.msra.mxu1 %v3407_v2  ;;  %v3500_v2 = vld [vmem:[#allocation10 + $0x1e0] ss:$16 sps:$4 sm:$0xff]  }
 0x195   :  { %944 = vmatprep.subr.bf16.mxu1 %v3415_v6 }
 0x196   :  { %922 = vmatpush1.bf16.msra.mxu0 %v3470_v44 }
 0x197   :  { %923 = vmatprep.subr.bf16.mxu0 %v3471_v45 }
 0x198   :  { %945 = vmatpush1.bf16.msra.mxu1 %v3413_v7 }
 0x199   :  { %946 = vmatprep.subr.bf16.mxu1 %v3421_v10 }
 0x19a   :  { %924 = vmatpush1.bf16.msra.mxu0 %v3476_v48 }
 0x19b   :  { %925 = vmatprep.subr.bf16.mxu0 %v3477_v49 }
 0x19c   :  { %947 = vmatpush1.bf16.msra.mxu1 %v3419_v11 }
 0x19d   :  { %948 = vmatprep.subr.bf16.mxu1 %v3427_v14 }
 0x19e   :  { %926 = vmatpush1.bf16.msra.mxu0 %v3482_v53 }
 0x19f   :  { %927 = vmatprep.subr.bf16.mxu0 %v3483_v55  ;;  %v4183_v55 = vsub.s32 1, %v4164_v52 }
 0x1a0   :  { %949 = vmatpush1.bf16.msra.mxu1 %v3425_v15 }
 0x1a1   :  { %950 = vmatprep.subr.bf16.mxu1 %v3433_v18 }
 0x1a2   :  { %928 = vmatpush1.bf16.msra.mxu0 %v3488_v58 }
 0x1a3   :  { %929 = vmatprep.subr.bf16.mxu0 %v3489_v59 }
 0x1a4   :  { %951 = vmatpush1.bf16.msra.mxu1 %v3431_v19 }
 0x1a5   :  { %952 = vmatprep.subr.bf16.mxu1 %v3439_v22 }
 0x1a6   :  { %930 = vmatpush1.bf16.msra.mxu0 %v3494_v62 }
 0x1a7   :  { %931 = vmatprep.subr.bf16.mxu0 %v3495_v63 }
 0x1a8   :  { %953 = vmatpush1.bf16.msra.mxu1 %v3437_v23 }
 0x1a9   :  { %954 = vmatprep.subr.bf16.mxu1 %v3445_v26 }
 0x1aa   :  { %932 = vmatpush1.bf16.msra.mxu0 %v3500_v2 }
 0x1ac   :  { %955 = vmatpush1.bf16.msra.mxu1 %v3443_v27 }
 0x1ad   :  { %956 = vmatprep.subr.bf16.mxu1 %v3451_v30 }
 0x1b0   :  { %957 = vmatpush1.bf16.msra.mxu1 %v3449_v31 }
 0x1b1   :  { %958 = vmatprep.subr.bf16.mxu1 %v3457_v34 }
 0x1b4   :  { %959 = vmatpush1.bf16.msra.mxu1 %v3455_v35 }
 0x1b5   :  { %960 = vmatprep.subr.bf16.mxu1 %v3463_v38 }
 0x1b8   :  { %961 = vmatpush1.bf16.msra.mxu1 %v3461_v39 }
 0x1b9   :  { %962 = vmatprep.subr.bf16.mxu1 %v3469_v42 }
 0x1bc   :  { %963 = vmatpush1.bf16.msra.mxu1 %v3467_v43  ;;  %v4030_v43 = vmov 1966171168  }
 0x1bd   :  { %964 = vmatprep.subr.bf16.mxu1 %v3475_v46  ;;  %v447_v44 = vunpack.c.l.s4 %v4030_v43  ;;  %v3548_v43 = vld [vmem:[#allocation11 + $0x194] ss:$28 sps:$4 sm:$0xff]  }
 0x1bf   :  { %v448_v45 = vunpack.c.0.s8 %v447_v44  ;;  %v3543_v44 = vld [vmem:[#allocation11 + $0x188] ss:$28 sps:$4 sm:$0xff]  }
 0x1c0   :  { %965 = vmatpush1.bf16.msra.mxu1 %v3473_v47 }
 0x1c1   :  { %966 = vmatprep.subr.bf16.mxu1 %v3481_v50  ;;  %v4175_v47 = vsub.s32 %v448_v45, %v4164_v52  ;;  %v3546_v45 = vld [vmem:[#allocation11 + $0x190] ss:$28 sps:$4 sm:$0xff]  }
 0x1c4   :  { %967 = vmatpush1.bf16.msra.mxu1 %v3479_v51  ;;  %v403_v51 = vld [vmem:[%s4286_s5] sm:$0x3] }
 0x1c5   :  { %968 = vmatprep.subr.bf16.mxu1 %v3487_v56 }
 0x1c8   :  { %969 = vmatpush1.bf16.msra.mxu1 %v3485_v57 }
 0x1c9   :  { %970 = vmatprep.subr.bf16.mxu1 %v3493_v60 }
 0x1cc   :  { %971 = vmatpush1.bf16.msra.mxu1 %v3491_v61 }
 0x1cd   :  { %972 = vmatprep.subr.bf16.mxu1 %v3499_v0 }
 0x1d0   :  { %973 = vmatpush1.bf16.msra.mxu1 %v3497_v1  ;;  %v404_v1 = vld [vmem:[%s4287_s6] sm:$0x3] }
 0x266   :  { %v396_v3 = vpop.f32.mrb[4].mxu1 }
 0x267   :  { %v405_v4 = vrot.slane %v396_v3, 4  ;;  %v419_v5 = vmul.f32 %v396_v3, %v396_v3  ;;  %v398_v6 = vpop.f32.mrb[5].mxu1 }
 0x268   :  { %v411_v7 = vrot.slane %v398_v6, 4  ;;  %v420_v8 = vmul.f32 %v398_v6, %v398_v6  ;;  %v400_v9 = vpop.f32.mrb[6].mxu1 }
 0x269   :  { %v406_v10 = vadd.f32 %v405_v4, %v396_v3  ;;  %v421_v11 = vrot.slane %v419_v5, 4  ;;  %v401_v12 = vpop.f32.mrb[7].mxu1 }
 0x26a   :  { %v412_v13 = vadd.f32 %v411_v7, %v398_v6  ;;  %v427_v14 = vrot.slane %v420_v8, 4 }
 0x26b   :  { %v407_v15 = vrot.slane %v406_v10, 2  ;;  %v422_v16 = vadd.f32 %v421_v11, %v419_v5 }
 0x26c   :  { %v413_v17 = vrot.slane %v412_v13, 2  ;;  %v428_v18 = vadd.f32 %v427_v14, %v420_v8  ;;  %v3503_v14 = vld [vmem:[#allocation11 + $0x4] ss:$28 sps:$4 sm:$0xff]  }
 0x26d   :  { %v408_v19 = vadd.f32 %v407_v15, %v406_v10  ;;  %v423_v20 = vrot.slane %v422_v16, 2  ;;  %v3506_v15 = vld [vmem:[#allocation11 + $0xc] ss:$28 sps:$4 sm:$0xff]   ;;  %2599 = vmatprep.subr.bf16.mxu0 %v3503_v14 }
 0x26e   :  { %v414_v21 = vadd.f32 %v413_v17, %v412_v13  ;;  %v429_v22 = vrot.slane %v428_v18, 2  ;;  %v3504_v17 = vld [vmem:[#allocation11 + $0x8] ss:$28 sps:$4 sm:$0xff]   ;;  %2681 = vmatprep.subr.bf16.mxu1 %v3506_v15 }
 0x26f   :  { %v409_v23 = vrot.slane %v408_v19, 1  ;;  %v424_v24 = vadd.f32 %v423_v20, %v422_v16  ;;  %v3501_v16 = vld [vmem:[#allocation11] ss:$28 sps:$4 sm:$0xff]   ;;  %v3507_v20 = vld [vmem:[#allocation11 + $0x38] ss:$28 sps:$4 sm:$0xff]  }
 0x270   :  { %v415_v25 = vrot.slane %v414_v21, 1  ;;  %v430_v26 = vadd.f32 %v429_v22, %v428_v18  ;;  %v3509_v18 = vld [vmem:[#allocation11 + $0x3c] ss:$28 sps:$4 sm:$0xff]   ;;  %v3515_v22 = vld [vmem:[#allocation11 + $0x74] ss:$28 sps:$4 sm:$0xff]  }
 0x271   :  { %v410_v27 = vadd.f32 %v409_v23, %v408_v19  ;;  %v425_v28 = vrot.slane %v424_v24, 1  ;;  %v3512_v19 = vld [vmem:[#allocation11 + $0x44] ss:$28 sps:$4 sm:$0xff]   ;;  %v3518_v23 = vld [vmem:[#allocation11 + $0x7c] ss:$28 sps:$4 sm:$0xff]  }
 0x272   :  { %v416_v29 = vadd.f32 %v415_v25, %v414_v21  ;;  %v431_v30 = vrot.slane %v430_v26, 1  ;;  %v3510_v21 = vld [vmem:[#allocation11 + $0x40] ss:$28 sps:$4 sm:$0xff]   ;;  %v3516_v25 = vld [vmem:[#allocation11 + $0x78] ss:$28 sps:$4 sm:$0xff]  }
 0x273   :  { %v417_v31 = vmul.f32 0.125, %v410_v27  ;;  %v426_v32 = vadd.f32 %v425_v28, %v424_v24  ;;  %v3513_v24 = vld [vmem:[#allocation11 + $0x70] ss:$28 sps:$4 sm:$0xff]   ;;  %v3519_v28 = vld [vmem:[#allocation11 + $0xa8] ss:$28 sps:$4 sm:$0xff]  }
 0x274   :  { %v418_v33 = vmul.f32 0.125, %v416_v29  ;;  %v432_v34 = vadd.f32 %v431_v30, %v430_v26  ;;  %v3521_v26 = vld [vmem:[#allocation11 + $0xac] ss:$28 sps:$4 sm:$0xff]   ;;  %v3524_v27 = vld [vmem:[#allocation11 + $0xb4] ss:$28 sps:$4 sm:$0xff]  }
 0x275   :  { %v433_v35 = vmul.f32 0.125, %v426_v32  ;;  %v435_v36 = vmul.f32 %v417_v31, %v417_v31  ;;  %v3522_v29 = vld [vmem:[#allocation11 + $0xb0] ss:$28 sps:$4 sm:$0xff]   ;;  %v3527_v30 = vld [vmem:[#allocation11 + $0xe4] ss:$28 sps:$4 sm:$0xff]  }
 0x276   :  { %v434_v37 = vmul.f32 0.125, %v432_v34  ;;  %v436_v38 = vmul.f32 %v418_v33, %v418_v33  ;;  %v3525_v32 = vld [vmem:[#allocation11 + $0xe0] ss:$28 sps:$4 sm:$0xff]   ;;  %v3593_v14 = vld [vmem:[#allocation11 + $0x34c] ss:$28 sps:$4 sm:$0xff]  }
 0x277   :  { %v437_v39 = vsub.f32 %v433_v35, %v435_v36  ;;  %v3533_v34 = vld [vmem:[#allocation11 + $0x11c] ss:$28 sps:$4 sm:$0xff]   ;;  %v3591_v15 = vld [vmem:[#allocation11 + $0x348] ss:$28 sps:$4 sm:$0xff]  }
 0x278   :  { %v438_v40 = vsub.f32 %v434_v37, %v436_v38  ;;  %v3531_v35 = vld [vmem:[#allocation11 + $0x118] ss:$28 sps:$4 sm:$0xff]   ;;  %v3534_v36 = vld [vmem:[#allocation11 + $0x120] ss:$28 sps:$4 sm:$0xff]  }
 0x279   :  { %v439_v41 = vadd.f32 0.8, %v437_v39  ;;  %v3536_v37 = vld [vmem:[#allocation11 + $0x124] ss:$28 sps:$4 sm:$0xff]   ;;  %v3539_v38 = vld [vmem:[#allocation11 + $0x154] ss:$28 sps:$4 sm:$0xff]  }
 0x27a   :  { %v440_v42 = vadd.f32 0.8, %v438_v40  ;;  %v3542_v39 = vld [vmem:[#allocation11 + $0x15c] ss:$28 sps:$4 sm:$0xff]   ;;  %v3537_v40 = vld [vmem:[#allocation11 + $0x150] ss:$28 sps:$4 sm:$0xff]  }
 0x27b   :  { %3823 = vrsqrt.f32 %v439_v41  ;;  %v3540_v41 = vld [vmem:[#allocation11 + $0x158] ss:$28 sps:$4 sm:$0xff]  }
 0x27c   :  { %3825 = vrsqrt.f32 %v440_v42  ;;  %v3545_v42 = vld [vmem:[#allocation11 + $0x18c] ss:$28 sps:$4 sm:$0xff]  }
 0x285   :  { %v3824_v46 = vpop.eup %3823 }
 0x286   :  { %v3826_v48 = vpop.eup %3825 }
 0x287   :  { %v445_v49 = vcombine.low %v3824_v46, %v3826_v48  ;;  %v3551_v46 = vld [vmem:[#allocation11 + $0x1c4] ss:$28 sps:$4 sm:$0xff]   ;;  %v3554_v48 = vld [vmem:[#allocation11 + $0x1cc] ss:$28 sps:$4 sm:$0xff]  }
 0x289   :  { %v452_v50 = vrot.slane %v445_v49, %v4175_v47  ;;  %v3549_v49 = vld [vmem:[#allocation11 + $0x1c0] ss:$28 sps:$4 sm:$0xff]  }
 0x28b   :  { %v459_v53 = vrot.slane %v452_v50, %v4175_v47  ;;  %v3552_v50 = vld [vmem:[#allocation11 + $0x1c8] ss:$28 sps:$4 sm:$0xff]  }
 0x28d   :  { %v461_v56 = vmul.f32 %v459_v53, %v403_v51  ;;  %v3557_v51 = vld [vmem:[#allocation11 + $0x1fc] ss:$28 sps:$4 sm:$0xff]   ;;  %v3560_v53 = vld [vmem:[#allocation11 + $0x204] ss:$28 sps:$4 sm:$0xff]  }
 0x28f   :  { %v466_v57 = vrot.slane %v461_v56, %v4170_v54  ;;  %v470_v58 = vrot.slane %v461_v56, %v4183_v55  ;;  %v3555_v56 = vld [vmem:[#allocation11 + $0x1f8] ss:$28 sps:$4 sm:$0xff]  }
 0x291   :  { %v473_v59 = vmul.f32 %v466_v57, %v417_v31  ;;  %v474_v60 = vmul.f32 %v470_v58, %v418_v33  ;;  %v495_v61 = vmul.f32 %v470_v58, %v398_v6  ;;  %v494_v62 = vmul.f32 %v466_v57, %v396_v3  ;;  %v3530_v31 = vld [vmem:[#allocation11 + $0xec] ss:$28 sps:$4 sm:$0xff]   ;;  %v3558_v57 = vld [vmem:[#allocation11 + $0x200] ss:$28 sps:$4 sm:$0xff]   ;;  %v3563_v58 = vld [vmem:[#allocation11 + $0x234] ss:$28 sps:$4 sm:$0xff]  }
 0x292   :  { %v3528_v33 = vld [vmem:[#allocation11 + $0xe8] ss:$28 sps:$4 sm:$0xff]  }
 0x293   :  { %v477_v63 = vcombine.low %v473_v59, %v474_v60  ;;  %v3566_v59 = vld [vmem:[#allocation11 + $0x23c] ss:$28 sps:$4 sm:$0xff]   ;;  %v3561_v60 = vld [vmem:[#allocation11 + $0x230] ss:$28 sps:$4 sm:$0xff]  }
 0x295   :  { %v484_v0 = vrot.slane %v477_v63, %v4175_v47  ;;  %v3572_v63 = vld [vmem:[#allocation11 + $0x274] ss:$28 sps:$4 sm:$0xff]  }
 0x297   :  { %v491_v2 = vrot.slane %v484_v0, %v4175_v47  ;;  %v3567_v0 = vld [vmem:[#allocation11 + $0x268] ss:$28 sps:$4 sm:$0xff]  }
 0x299   :  { %v493_v4 = vsub.f32 %v404_v1, %v491_v2  ;;  %v3570_v1 = vld [vmem:[#allocation11 + $0x270] ss:$28 sps:$4 sm:$0xff]   ;;  %v3575_v2 = vld [vmem:[#allocation11 + $0x2a4] ss:$28 sps:$4 sm:$0xff]  }
 0x29b   :  { %v504_v5 = vrot.slane %v493_v4, %v4183_v55  ;;  %v500_v7 = vrot.slane %v493_v4, %v4170_v54  ;;  %v3578_v4 = vld [vmem:[#allocation11 + $0x2ac] ss:$28 sps:$4 sm:$0xff]  }
 0x29d   :  { %v508_v8 = vadd.f32 %v504_v5, %v495_v61  ;;  %v507_v9 = vadd.f32 %v500_v7, %v494_v62  ;;  %v3564_v61 = vld [vmem:[#allocation11 + $0x238] ss:$28 sps:$4 sm:$0xff]   ;;  %v3569_v62 = vld [vmem:[#allocation11 + $0x26c] ss:$28 sps:$4 sm:$0xff]   ;;  %v3573_v5 = vld [vmem:[#allocation11 + $0x2a0] ss:$28 sps:$4 sm:$0xff]  }
 0x29e   :  { %v3576_v7 = vld [vmem:[#allocation11 + $0x2a8] ss:$28 sps:$4 sm:$0xff]  }
 0x29f   :  { %vm510_vm2 = vcmp.ge.f32.partialorder %v508_v8, 0.0  ;;  %v512_v10 = vmul.f32 0.25, %v508_v8  ;;  %vm509_vm3 = vcmp.ge.f32.partialorder %v507_v9, 0.0  ;;  %v511_v3 = vmul.f32 0.25, %v507_v9 }
 0x2a1   :  { %v514_v6 = vsel %vm510_vm2, %v508_v8, %v512_v10  ;;  %v513_v11 = vsel %vm509_vm3, %v507_v9, %v511_v3  ;;  %v3581_v8 = vld [vmem:[#allocation11 + $0x2dc] ss:$28 sps:$4 sm:$0xff]   ;;  %v3584_v9 = vld [vmem:[#allocation11 + $0x2e4] ss:$28 sps:$4 sm:$0xff]  }
 0x2a2   :  { %v516_v12 = vpack.c.bf16 %v514_v6, %v514_v6  ;;  %v515_v13 = vpack.c.bf16 %v513_v11, %v513_v11  ;;  %v3579_v10 = vld [vmem:[#allocation11 + $0x2d8] ss:$28 sps:$4 sm:$0xff]   ;;  %v3582_v3 = vld [vmem:[#allocation11 + $0x2e0] ss:$28 sps:$4 sm:$0xff]  }
 0x2a3   :  { %v3587_v6 = vld [vmem:[#allocation11 + $0x314] ss:$28 sps:$4 sm:$0xff]   ;;  %v3590_v11 = vld [vmem:[#allocation11 + $0x31c] ss:$28 sps:$4 sm:$0xff]  }
 0x2a4   :  { %933 = vmatprep.mubr.bf16.mxu0 %v516_v12  ;;  %974 = vmatprep.mubr.bf16.mxu1 %v516_v12  ;;  %v3585_v12 = vld [vmem:[#allocation11 + $0x310] ss:$28 sps:$4 sm:$0xff]  }
 0x2a5   :  { %934 = vmatmul.mubr.bf16.vlgmr.msra.gmra.mrb[0].mxu0 %v515_v13  ;;  %975 = vmatmul.mubr.bf16.vlgmr.msra.gmra.mrb[8].mxu1 %v515_v13  ;;  %v3588_v13 = vld [vmem:[#allocation11 + $0x318] ss:$28 sps:$4 sm:$0xff]  }
 0x2a6   :  { %2600 = vmatpush1.bf16.msra.mxu0 %v3501_v16  ;;  %2682 = vmatpush1.bf16.msra.mxu1 %v3504_v17  ;;  %v3596_v16 = vld [vmem:[#allocation11 + $0x354] ss:$28 sps:$4 sm:$0xff]  }
 0x2a7   :  { %2601 = vmatprep.subr.bf16.mxu0 %v3509_v18  ;;  %2683 = vmatprep.subr.bf16.mxu1 %v3512_v19  ;;  %v3594_v17 = vld [vmem:[#allocation11 + $0x350] ss:$28 sps:$4 sm:$0xff]   ;;  %v3599_v18 = vld [vmem:[#allocation11 + $0x384] ss:$28 sps:$4 sm:$0xff]  }
 0x2a8   :  { %v3602_v19 = vld [vmem:[#allocation11 + $0x38c] ss:$28 sps:$4 sm:$0xff]  }
 0x2aa   :  { %2602 = vmatpush1.bf16.msra.mxu0 %v3507_v20  ;;  %2684 = vmatpush1.bf16.msra.mxu1 %v3510_v21 }
 0x2ab   :  { %2603 = vmatprep.subr.bf16.mxu0 %v3515_v22  ;;  %2685 = vmatprep.subr.bf16.mxu1 %v3518_v23 }
 0x2ae   :  { %2604 = vmatpush1.bf16.msra.mxu0 %v3513_v24  ;;  %2686 = vmatpush1.bf16.msra.mxu1 %v3516_v25 }
 0x2af   :  { %2605 = vmatprep.subr.bf16.mxu0 %v3521_v26  ;;  %2687 = vmatprep.subr.bf16.mxu1 %v3524_v27 }
 0x2b2   :  { %2606 = vmatpush1.bf16.msra.mxu0 %v3519_v28  ;;  %2688 = vmatpush1.bf16.msra.mxu1 %v3522_v29 }
 0x2b3   :  { %2607 = vmatprep.subr.bf16.mxu0 %v3527_v30  ;;  %2689 = vmatprep.subr.bf16.mxu1 %v3530_v31 }
 0x2b6   :  { %2608 = vmatpush1.bf16.msra.mxu0 %v3525_v32  ;;  %2690 = vmatpush1.bf16.msra.mxu1 %v3528_v33 }
 0x2b7   :  { %2609 = vmatprep.subr.bf16.mxu0 %v3533_v34  ;;  %2691 = vmatprep.subr.bf16.mxu1 %v3536_v37 }
 0x2ba   :  { %2610 = vmatpush1.bf16.msra.mxu0 %v3531_v35  ;;  %2692 = vmatpush1.bf16.msra.mxu1 %v3534_v36 }
 0x2bb   :  { %2611 = vmatprep.subr.bf16.mxu0 %v3539_v38  ;;  %2693 = vmatprep.subr.bf16.mxu1 %v3542_v39 }
 0x2be   :  { %2612 = vmatpush1.bf16.msra.mxu0 %v3537_v40  ;;  %2694 = vmatpush1.bf16.msra.mxu1 %v3540_v41 }
 0x2bf   :  { %2613 = vmatprep.subr.bf16.mxu0 %v3545_v42  ;;  %2695 = vmatprep.subr.bf16.mxu1 %v3548_v43 }
 0x2c2   :  { %2614 = vmatpush1.bf16.msra.mxu0 %v3543_v44  ;;  %2696 = vmatpush1.bf16.msra.mxu1 %v3546_v45 }
 0x2c3   :  { %2615 = vmatprep.subr.bf16.mxu0 %v3551_v46  ;;  %2697 = vmatprep.subr.bf16.mxu1 %v3554_v48 }
 0x2c6   :  { %2616 = vmatpush1.bf16.msra.mxu0 %v3549_v49  ;;  %2698 = vmatpush1.bf16.msra.mxu1 %v3552_v50 }
 0x2c7   :  { %2617 = vmatprep.subr.bf16.mxu0 %v3557_v51  ;;  %2699 = vmatprep.subr.bf16.mxu1 %v3560_v53 }
 0x2ca   :  { %2618 = vmatpush1.bf16.msra.mxu0 %v3555_v56  ;;  %2700 = vmatpush1.bf16.msra.mxu1 %v3558_v57 }
 0x2cb   :  { %2619 = vmatprep.subr.bf16.mxu0 %v3563_v58  ;;  %2701 = vmatprep.subr.bf16.mxu1 %v3566_v59 }
 0x2ce   :  { %2620 = vmatpush1.bf16.msra.mxu0 %v3561_v60  ;;  %2702 = vmatpush1.bf16.msra.mxu1 %v3564_v61 }
 0x2cf   :  { %2621 = vmatprep.subr.bf16.mxu0 %v3569_v62  ;;  %2703 = vmatprep.subr.bf16.mxu1 %v3572_v63 }
 0x2d2   :  { %2622 = vmatpush1.bf16.msra.mxu0 %v3567_v0  ;;  %2704 = vmatpush1.bf16.msra.mxu1 %v3570_v1 }
 0x2d3   :  { %2623 = vmatprep.subr.bf16.mxu0 %v3575_v2  ;;  %2705 = vmatprep.subr.bf16.mxu1 %v3578_v4 }
 0x2d6   :  { %2624 = vmatpush1.bf16.msra.mxu0 %v3573_v5  ;;  %2706 = vmatpush1.bf16.msra.mxu1 %v3576_v7 }
 0x2d7   :  { %2625 = vmatprep.subr.bf16.mxu0 %v3581_v8  ;;  %2707 = vmatprep.subr.bf16.mxu1 %v3584_v9 }
 0x2da   :  { %2626 = vmatpush1.bf16.msra.mxu0 %v3579_v10  ;;  %2708 = vmatpush1.bf16.msra.mxu1 %v3582_v3 }
 0x2db   :  { %2627 = vmatprep.subr.bf16.mxu0 %v3587_v6  ;;  %2709 = vmatprep.subr.bf16.mxu1 %v3590_v11 }
 0x2de   :  { %2628 = vmatpush1.bf16.msra.mxu0 %v3585_v12  ;;  %2710 = vmatpush1.bf16.msra.mxu1 %v3588_v13 }
 0x2df   :  { %2629 = vmatprep.subr.bf16.mxu0 %v3593_v14  ;;  %2711 = vmatprep.subr.bf16.mxu1 %v3596_v16 }
 0x2e2   :  { %2630 = vmatpush1.bf16.msra.mxu0 %v3591_v15  ;;  %2712 = vmatpush1.bf16.msra.mxu1 %v3594_v17 }
 0x2e3   :  { %2640 = vmatprep.subr.bf16.mxu0 %v3599_v18  ;;  %2722 = vmatprep.subr.bf16.mxu1 %v3602_v19 }
 0x378   :  { %v4194_v20 = vpop.f32.mrb[0].mxu0  ;;  %v4196_v21 = vpop.f32.mrb[8].mxu1 }
 0x379   :  { %v985_v22 = vrot.slane %v4194_v20, 4  ;;  %v1013_v23 = vmul.f32 %v4194_v20, %v4194_v20  ;;  %v997_v24 = vrot.slane %v4196_v21, 4  ;;  %v1015_v25 = vmul.f32 %v4196_v21, %v4196_v21  ;;  %v4204_v26 = vpop.f32.mrb[1].mxu0  ;;  %v4206_v27 = vpop.f32.mrb[9].mxu1 }
 0x37a   :  { %v991_v28 = vrot.slane %v4204_v26, 4  ;;  %v1014_v29 = vmul.f32 %v4204_v26, %v4204_v26  ;;  %v1003_v30 = vrot.slane %v4206_v27, 4  ;;  %v1016_v31 = vmul.f32 %v4206_v27, %v4206_v27  ;;  %v939_v32 = vpop.f32.mrb[2].mxu0  ;;  %v980_v33 = vpop.f32.mrb[10].mxu1 }
 0x37b   :  { %v986_v34 = vadd.f32 %v985_v22, %v4194_v20  ;;  %v1017_v35 = vrot.slane %v1013_v23, 4  ;;  %v998_v36 = vadd.f32 %v997_v24, %v4196_v21  ;;  %v1029_v37 = vrot.slane %v1015_v25, 4  ;;  %v940_v38 = vpop.f32.mrb[3].mxu0  ;;  %v981_v39 = vpop.f32.mrb[11].mxu1 }
 0x37c   :  { %v992_v40 = vadd.f32 %v991_v28, %v4204_v26  ;;  %v1023_v41 = vrot.slane %v1014_v29, 4  ;;  %v1004_v42 = vadd.f32 %v1003_v30, %v4206_v27  ;;  %v1035_v43 = vrot.slane %v1016_v31, 4 }
 0x37d   :  { %v987_v44 = vrot.slane %v986_v34, 2  ;;  %v1018_v45 = vadd.f32 %v1017_v35, %v1013_v23  ;;  %v999_v46 = vrot.slane %v998_v36, 2  ;;  %v1030_v48 = vadd.f32 %v1029_v37, %v1015_v25 }
 0x37e   :  { %v993_v49 = vrot.slane %v992_v40, 2  ;;  %v1024_v50 = vadd.f32 %v1023_v41, %v1014_v29  ;;  %v1005_v51 = vrot.slane %v1004_v42, 2  ;;  %v1036_v53 = vadd.f32 %v1035_v43, %v1016_v31 }
 0x37f   :  { %v988_v56 = vadd.f32 %v987_v44, %v986_v34  ;;  %v1019_v57 = vrot.slane %v1018_v45, 2  ;;  %v1000_v58 = vadd.f32 %v999_v46, %v998_v36  ;;  %v1031_v59 = vrot.slane %v1030_v48, 2 }
 0x380   :  { %v994_v60 = vadd.f32 %v993_v49, %v992_v40  ;;  %v1025_v61 = vrot.slane %v1024_v50, 2  ;;  %v1006_v62 = vadd.f32 %v1005_v51, %v1004_v42  ;;  %v1037_v63 = vrot.slane %v1036_v53, 2 }
 0x381   :  { %v989_v0 = vrot.slane %v988_v56, 1  ;;  %v1020_v1 = vadd.f32 %v1019_v57, %v1018_v45  ;;  %v1001_v2 = vrot.slane %v1000_v58, 1  ;;  %v1032_v4 = vadd.f32 %v1031_v59, %v1030_v48  ;;  %v983_v57 = vld [vmem:[%s4289_s8] sm:$0xf] }
 0x382   :  { %v995_v5 = vrot.slane %v994_v60, 1  ;;  %v1026_v7 = vadd.f32 %v1025_v61, %v1024_v50  ;;  %v1007_v8 = vrot.slane %v1006_v62, 1  ;;  %v1038_v9 = vadd.f32 %v1037_v63, %v1036_v53 }
 0x383   :  { %v990_v10 = vadd.f32 %v989_v0, %v988_v56  ;;  %v1021_v3 = vrot.slane %v1020_v1, 1  ;;  %v1002_v6 = vadd.f32 %v1001_v2, %v1000_v58  ;;  %v1033_v11 = vrot.slane %v1032_v4, 1 }
 0x384   :  { %v996_v12 = vadd.f32 %v995_v5, %v994_v60  ;;  %v1027_v13 = vrot.slane %v1026_v7, 1  ;;  %v1008_v14 = vadd.f32 %v1007_v8, %v1006_v62  ;;  %v1039_v15 = vrot.slane %v1038_v9, 1 }
 0x385   :  { %v1009_v16 = vmul.f32 0.125, %v990_v10  ;;  %v1022_v17 = vadd.f32 %v1021_v3, %v1020_v1  ;;  %v1011_v18 = vmul.f32 0.125, %v1002_v6  ;;  %v1034_v19 = vadd.f32 %v1033_v11, %v1032_v4 }
 0x386   :  { %v1010_v22 = vmul.f32 0.125, %v996_v12  ;;  %v1028_v23 = vadd.f32 %v1027_v13, %v1026_v7  ;;  %v1012_v24 = vmul.f32 0.125, %v1008_v14  ;;  %v1040_v25 = vadd.f32 %v1039_v15, %v1038_v9  ;;  %v984_v14 = vld [vmem:[%s4290_s9] sm:$0xf]  ;;  %s4031_s9 = smov [#allocation13]  }
 0x387   :  { %v1041_v28 = vmul.f32 0.125, %v1022_v17  ;;  %v1045_v29 = vmul.f32 %v1009_v16, %v1009_v16  ;;  %v1043_v30 = vmul.f32 0.125, %v1034_v19  ;;  %v1047_v31 = vmul.f32 %v1011_v18, %v1011_v18  ;;  %s2945_s19 = sshll.u32 %s4031_s9, 4  ;;  %s2946_s19 = int_to_ptr.vmem [resolvable:$true] %s2945_s19 }
 0x388   :  { %v1042_v32 = vmul.f32 0.125, %v1028_v23  ;;  %v1046_v33 = vmul.f32 %v1010_v22, %v1010_v22  ;;  %v1044_v34 = vmul.f32 0.125, %v1040_v25  ;;  %v1048_v35 = vmul.f32 %v1012_v24, %v1012_v24  ;;  %s3981_s3 = scalar_lea.vmem %s2946_s19, 896  ;;  %p3986_p7 = scmp.lt.s32.totalorder %s2946_s19, %s2946_s19 }
 0x389   :  { %v1049_v36 = vsub.f32 %v1041_v28, %v1045_v29  ;;  %v1051_v37 = vsub.f32 %v1043_v30, %v1047_v31  ;;  %v1102_v59 = vsub.s32 2, %v4164_v52  ;;  %v1106_v60 = vsub.s32 3, %v4164_v52  ;;  %v3597_v30 = vld [vmem:[#allocation11 + $0x380] ss:$28 sps:$4 sm:$0xff]   ;;  %p3982_p6 = scmp.ne.s32.totalorder %s2946_s19, %s3981_s3  ;;  %p3987_p8 = scmp.lt.s32.totalorder %s3981_s3, %s3981_s3 }
 0x38a   :  { %v1050_v38 = vsub.f32 %v1042_v32, %v1046_v33  ;;  %v1052_v39 = vsub.f32 %v1044_v34, %v1048_v35  ;;  %v3605_v32 = vld [vmem:[#allocation11 + $0x3bc] ss:$28 sps:$4 sm:$0xff]   ;;  %v3608_v33 = vld [vmem:[#allocation11 + $0x3c4] ss:$28 sps:$4 sm:$0xff]  }
 0x38b   :  { %v1053_v40 = vadd.f32 0.8, %v1049_v36  ;;  %v1055_v41 = vadd.f32 0.8, %v1051_v37  ;;  %v3603_v35 = vld [vmem:[#allocation11 + $0x3b8] ss:$28 sps:$4 sm:$0xff]   ;;  %p3988_p9 = por %p3987_p8, %p3986_p7 }
 0x38c   :  { %v1054_v42 = vadd.f32 0.8, %v1050_v38  ;;  %v1056_v43 = vadd.f32 0.8, %v1052_v39  ;;  %v3606_v36 = vld [vmem:[#allocation11 + $0x3c0] ss:$28 sps:$4 sm:$0xff]  }
 0x38d   :  { %3827 = vrsqrt.f32 %v1053_v40  ;;  %v3611_v37 = vld [vmem:[#allocation11 + $0x3f4] ss:$28 sps:$4 sm:$0xff]   ;;  %v3614_v38 = vld [vmem:[#allocation11 + $0x3fc] ss:$28 sps:$4 sm:$0xff]   ;;  %p3989_p10 = pnand %p3988_p9, %p3982_p6 }
 0x38e   :  { %3829 = vrsqrt.f32 %v1055_v41  ;;  %v3609_v39 = vld [vmem:[#allocation11 + $0x3f0] ss:$28 sps:$4 sm:$0xff]   ;;  %v3612_v40 = vld [vmem:[#allocation11 + $0x3f8] ss:$28 sps:$4 sm:$0xff]  }
 0x38f   :  { %3831 = vrsqrt.f32 %v1054_v42  ;;  %v3617_v41 = vld [vmem:[#allocation11 + $0x42c] ss:$28 sps:$4 sm:$0xff]   ;;  %v3620_v42 = vld [vmem:[#allocation11 + $0x434] ss:$28 sps:$4 sm:$0xff]  }
 0x390   :  { %3833 = vrsqrt.f32 %v1056_v43  ;;  %v3615_v43 = vld [vmem:[#allocation11 + $0x428] ss:$28 sps:$4 sm:$0xff]  }
 0x397   :  { %v3828_v44 = vpop.eup %3827 }
 0x398   :  { %v3830_v45 = vpop.eup %3829 }
 0x399   :  { %v3832_v46 = vpop.eup %3831 }
 0x39a   :  { %v3834_v48 = vpop.eup %3833  ;;  %v1065_v49 = vcombine.low %v3828_v44, %v3832_v46  ;;  %v3618_v44 = vld [vmem:[#allocation11 + $0x430] ss:$28 sps:$4 sm:$0xff]  }
 0x39b   :  { %v1066_v50 = vcombine.low %v3830_v45, %v3834_v48  ;;  %v3623_v45 = vld [vmem:[#allocation11 + $0x464] ss:$28 sps:$4 sm:$0xff]   ;;  %v3626_v46 = vld [vmem:[#allocation11 + $0x46c] ss:$28 sps:$4 sm:$0xff]  }
 0x39c   :  { %v1073_v51 = vrot.slane %v1065_v49, %v4175_v47  ;;  %v3621_v48 = vld [vmem:[#allocation11 + $0x460] ss:$28 sps:$4 sm:$0xff]   ;;  %v3624_v49 = vld [vmem:[#allocation11 + $0x468] ss:$28 sps:$4 sm:$0xff]  }
 0x39d   :  { %v1080_v53 = vrot.slane %v1066_v50, %v4175_v47  ;;  %v3629_v50 = vld [vmem:[#allocation11 + $0x49c] ss:$28 sps:$4 sm:$0xff]  }
 0x39f   :  { %v1081_v56 = vcombine.low %v1073_v51, %v1080_v53  ;;  %v3632_v51 = vld [vmem:[#allocation11 + $0x4a4] ss:$28 sps:$4 sm:$0xff]   ;;  %v3627_v53 = vld [vmem:[#allocation11 + $0x498] ss:$28 sps:$4 sm:$0xff]  }
 0x3a1   :  { %v1088_v58 = vrot.slane %v1081_v56, %v4175_v47  ;;  %v3630_v56 = vld [vmem:[#allocation11 + $0x4a0] ss:$28 sps:$4 sm:$0xff]  }
 0x3a3   :  { %v1090_v61 = vmul.f32 %v1088_v58, %v983_v57  ;;  %v3635_v57 = vld [vmem:[#allocation11 + $0x4d4] ss:$28 sps:$4 sm:$0xff]   ;;  %v3638_v58 = vld [vmem:[#allocation11 + $0x4dc] ss:$28 sps:$4 sm:$0xff]  }
 0x3a5   :  { %v1095_v62 = vrot.slane %v1090_v61, %v4170_v54  ;;  %v1099_v63 = vrot.slane %v1090_v61, %v4183_v55  ;;  %v1103_v0 = vrot.slane %v1090_v61, %v1102_v59  ;;  %v1107_v1 = vrot.slane %v1090_v61, %v1106_v60  ;;  %v3641_v61 = vld [vmem:[#allocation11 + $0x50c] ss:$28 sps:$4 sm:$0xff]  }
 0x3a7   :  { %v1112_v2 = vmul.f32 %v1095_v62, %v1009_v16  ;;  %v1113_v4 = vmul.f32 %v1099_v63, %v1010_v22  ;;  %v1114_v5 = vmul.f32 %v1103_v0, %v1011_v18  ;;  %v1115_v7 = vmul.f32 %v1107_v1, %v1012_v24 }
 0x3a8   :  { %v1149_v8 = vmul.f32 %v1107_v1, %v4206_v27  ;;  %v1147_v9 = vmul.f32 %v1099_v63, %v4204_v26  ;;  %v1146_v10 = vmul.f32 %v1095_v62, %v4194_v20  ;;  %v1148_v3 = vmul.f32 %v1103_v0, %v4196_v21  ;;  %v3644_v62 = vld [vmem:[#allocation11 + $0x514] ss:$28 sps:$4 sm:$0xff]   ;;  %v3639_v63 = vld [vmem:[#allocation11 + $0x508] ss:$28 sps:$4 sm:$0xff]  }
 0x3a9   :  { %v1120_v52 = vcombine.low %v1112_v2, %v1113_v4  ;;  %v1121_v6 = vcombine.low %v1114_v5, %v1115_v7  ;;  %v3642_v0 = vld [vmem:[#allocation11 + $0x510] ss:$28 sps:$4 sm:$0xff]   ;;  %v3647_v1 = vld [vmem:[#allocation11 + $0x544] ss:$28 sps:$4 sm:$0xff]   ;;  %v3653_v7 = vld [vmem:[#allocation11 + $0x57c] ss:$28 sps:$4 sm:$0xff]  }
 0x3aa   :  { %v3650_v2 = vld [vmem:[#allocation11 + $0x54c] ss:$28 sps:$4 sm:$0xff]   ;;  %v3645_v4 = vld [vmem:[#allocation11 + $0x540] ss:$28 sps:$4 sm:$0xff]  }
 0x3ab   :  { %v1128_v11 = vrot.slane %v1120_v52, %v4175_v47  ;;  %v1135_v12 = vrot.slane %v1121_v6, %v4175_v47  ;;  %v3648_v5 = vld [vmem:[#allocation11 + $0x548] ss:$28 sps:$4 sm:$0xff]   ;;  %v3662_v52 = vld [vmem:[#allocation11 + $0x5bc] ss:$28 sps:$4 sm:$0xff]   ;;  %v3657_v6 = vld [vmem:[#allocation11 + $0x5b0] ss:$28 sps:$4 sm:$0xff]  }
 0x3ad   :  { %v1136_v13 = vcombine.low %v1128_v11, %v1135_v12  ;;  %v3660_v11 = vld [vmem:[#allocation11 + $0x5b8] ss:$28 sps:$4 sm:$0xff]   ;;  %v3665_v12 = vld [vmem:[#allocation11 + $0x5ec] ss:$28 sps:$4 sm:$0xff]  }
 0x3af   :  { %v1143_v15 = vrot.slane %v1136_v13, %v4175_v47  ;;  %v3668_v13 = vld [vmem:[#allocation11 + $0x5f4] ss:$28 sps:$4 sm:$0xff]  }
 0x3b1   :  { %v1145_v27 = vsub.f32 %v984_v14, %v1143_v15  ;;  %v3663_v14 = vld [vmem:[#allocation11 + $0x5e8] ss:$28 sps:$4 sm:$0xff]   ;;  %v3666_v15 = vld [vmem:[#allocation11 + $0x5f0] ss:$28 sps:$4 sm:$0xff]  }
 0x3b3   :  { %v1166_v16 = vrot.slane %v1145_v27, %v1106_v60  ;;  %v1158_v26 = vrot.slane %v1145_v27, %v4183_v55  ;;  %v1154_v20 = vrot.slane %v1145_v27, %v4170_v54  ;;  %v1162_v21 = vrot.slane %v1145_v27, %v1102_v59  ;;  %v3600_v55 = vld [vmem:[#allocation11 + $0x388] ss:$28 sps:$4 sm:$0xff]   ;;  %v3633_v59 = vld [vmem:[#allocation11 + $0x4d0] ss:$28 sps:$4 sm:$0xff]   ;;  %v3636_v60 = vld [vmem:[#allocation11 + $0x4d8] ss:$28 sps:$4 sm:$0xff]  }
 0x3b4   :  { %v3671_v27 = vld [vmem:[#allocation11 + $0x624] ss:$28 sps:$4 sm:$0xff]  }
 0x3b5   :  { %v1174_v17 = vadd.f32 %v1166_v16, %v1149_v8  ;;  %v1172_v18 = vadd.f32 %v1158_v26, %v1147_v9  ;;  %v1171_v19 = vadd.f32 %v1154_v20, %v1146_v10  ;;  %v4240_v22 = vadd.f32 %v1162_v21, %v1148_v3  ;;  %v3656_v8 = vld [vmem:[#allocation11 + $0x584] ss:$28 sps:$4 sm:$0xff]   ;;  %v3651_v9 = vld [vmem:[#allocation11 + $0x578] ss:$28 sps:$4 sm:$0xff]   ;;  %v3674_v16 = vld [vmem:[#allocation11 + $0x62c] ss:$28 sps:$4 sm:$0xff]  }
 0x3b6   :  { %v3654_v10 = vld [vmem:[#allocation11 + $0x580] ss:$28 sps:$4 sm:$0xff]   ;;  %v3659_v3 = vld [vmem:[#allocation11 + $0x5b4] ss:$28 sps:$4 sm:$0xff]   ;;  %v3672_v20 = vld [vmem:[#allocation11 + $0x628] ss:$28 sps:$4 sm:$0xff]  }
 0x3b7   :  { %vm1176_vm4 = vcmp.ge.f32.partialorder %v1172_v18, 0.0  ;;  %v1180_v23 = vmul.f32 0.25, %v1172_v18  ;;  %vm1175_vm5 = vcmp.ge.f32.partialorder %v1171_v19, 0.0  ;;  %v1179_v24 = vmul.f32 0.25, %v1171_v19  ;;  %v3669_v26 = vld [vmem:[#allocation11 + $0x620] ss:$28 sps:$4 sm:$0xff]  }
 0x3b8   :  { %vm1178_vm6 = vcmp.ge.f32.partialorder %v1174_v17, 0.0  ;;  %v1182_v25 = vmul.f32 0.25, %v1174_v17  ;;  %v3677_v21 = vld [vmem:[#allocation11 + $0x65c] ss:$28 sps:$4 sm:$0xff]   ;;  %vm1177_vm7 = vcmp.ge.f32.partialorder %v4240_v22, 0.0 }
 0x3b9   :  { %v1184_v28 = vsel %vm1176_vm4, %v1172_v18, %v1180_v23  ;;  %v1183_v47 = vsel %vm1175_vm5, %v1171_v19, %v1179_v24  ;;  %v3675_v18 = vld [vmem:[#allocation11 + $0x658] ss:$28 sps:$4 sm:$0xff]   ;;  %v3678_v19 = vld [vmem:[#allocation11 + $0x660] ss:$28 sps:$4 sm:$0xff]  }
 0x3ba   :  { %v4242_v29 = vpack.c.bf16 %v1184_v28, %v1184_v28  ;;  %v4244_v31 = vpack.c.bf16 %v1183_v47, %v1183_v47  ;;  %v1186_v54 = vsel %vm1178_vm6, %v1174_v17, %v1182_v25  ;;  %v3680_v17 = vld [vmem:[#allocation11 + $0x664] ss:$28 sps:$4 sm:$0xff]   ;;  %v3683_v23 = vld [vmem:[#allocation11 + $0x694] ss:$28 sps:$4 sm:$0xff]   ;;  %v3686_v24 = vld [vmem:[#allocation11 + $0x69c] ss:$28 sps:$4 sm:$0xff]  }
 0x3bb   :  { %v4250_v34 = vpack.c.bf16 %v1186_v54, %v1186_v54  ;;  %v3681_v25 = vld [vmem:[#allocation11 + $0x690] ss:$28 sps:$4 sm:$0xff]   ;;  %v3684_v28 = vld [vmem:[#allocation11 + $0x698] ss:$28 sps:$4 sm:$0xff]   ;;  %v3687_v54 = vld [vmem:[#allocation11 + $0x6c8] ss:$28 sps:$4 sm:$0xff]  }
 0x3bc   :  { %2631 = vmatprep.mubr.bf16.mxu0 %v4242_v29  ;;  %2713 = vmatprep.mubr.bf16.mxu1 %v4242_v29  ;;  %v3689_v47 = vld [vmem:[#allocation11 + $0x6cc] ss:$28 sps:$4 sm:$0xff]  }
 0x3bd   :  { %2632 = vmatmul.mubr.bf16.vlgmr.msra.gmra.mrb[4].mxu0 %v4244_v31  ;;  %2714 = vmatmul.mubr.bf16.vlgmr.msra.gmra.mrb[12].mxu1 %v4244_v31 }
 0x3be   :  { %2641 = vmatpush1.bf16.msra.mxu0 %v3597_v30  ;;  %2723 = vmatpush1.bf16.msra.mxu1 %v3600_v55  ;;  %v3692_v30 = vld [vmem:[#allocation11 + $0x6d4] ss:$28 sps:$4 sm:$0xff]   ;;  %v1181_v55 = vmul.f32 0.25, %v4240_v22 }
 0x3bf   :  { %2672 = vmatprep.mubr.bf16.mxu0 %v4250_v34  ;;  %2754 = vmatprep.mubr.bf16.mxu1 %v4250_v34 }
 0x3c0   :  { %2642 = vmatprep.subr.bf16.mxu0 %v3605_v32  ;;  %2724 = vmatprep.subr.bf16.mxu1 %v3608_v33  ;;  %v3690_v32 = vld [vmem:[#allocation11 + $0x6d0] ss:$28 sps:$4 sm:$0xff]  }
 0x3c1   :  { %v3695_v33 = vld [vmem:[#allocation11 + $0x14] ss:$28 sps:$4 sm:$0xff]  }
 0x3c2   :  { %2643 = vmatpush1.bf16.msra.mxu0 %v3603_v35  ;;  %2725 = vmatpush1.bf16.msra.mxu1 %v3606_v36  ;;  %v3696_v35 = vld [vmem:[#allocation11 + $0x1d8] ss:$28 sps:$4 sm:$0xff]   ;;  %v1185_v36 = vsel %vm1177_vm7, %v4240_v22, %v1181_v55  ;;  %v3702_v22 = vld [vmem:[#allocation11 + $0x50] ss:$28 sps:$4 sm:$0xff]   ;;  %v3766_v55 = vld [vmem:[#allocation11 + $0x6a8] ss:$28 sps:$4 sm:$0xff]  }
 0x3c3   :  { %2644 = vmatprep.subr.bf16.mxu0 %v3611_v37  ;;  %2726 = vmatprep.subr.bf16.mxu1 %v3614_v38  ;;  %v3693_v37 = vld [vmem:[#allocation11 + $0x10] ss:$28 sps:$4 sm:$0xff]   ;;  %v4257_v38 = vpack.c.bf16 %v1185_v36, %v1185_v36  ;;  %v3768_v36 = vld [vmem:[#allocation11 + $0x358] ss:$28 sps:$4 sm:$0xff]  }
 0x3c6   :  { %2645 = vmatpush1.bf16.msra.mxu0 %v3609_v39  ;;  %2727 = vmatpush1.bf16.msra.mxu1 %v3612_v40  ;;  %v3697_v39 = vld [vmem:[#allocation11 + $0x18] ss:$28 sps:$4 sm:$0xff]   ;;  %v3700_v40 = vld [vmem:[#allocation11 + $0x4c] ss:$28 sps:$4 sm:$0xff]  }
 0x3c7   :  { %2646 = vmatprep.subr.bf16.mxu0 %v3617_v41  ;;  %2728 = vmatprep.subr.bf16.mxu1 %v3620_v42  ;;  %v3701_v41 = vld [vmem:[#allocation11 + $0x210] ss:$28 sps:$4 sm:$0xff]   ;;  %v3698_v42 = vld [vmem:[#allocation11 + $0x48] ss:$28 sps:$4 sm:$0xff]  }
 0x3ca   :  { %2647 = vmatpush1.bf16.msra.mxu0 %v3615_v43  ;;  %2729 = vmatpush1.bf16.msra.mxu1 %v3618_v44  ;;  %v3705_v43 = vld [vmem:[#allocation11 + $0x84] ss:$28 sps:$4 sm:$0xff]  }
 0x3cb   :  { %2648 = vmatprep.subr.bf16.mxu0 %v3623_v45  ;;  %2730 = vmatprep.subr.bf16.mxu1 %v3626_v46  ;;  %v3706_v44 = vld [vmem:[#allocation11 + $0x248] ss:$28 sps:$4 sm:$0xff]   ;;  %v3703_v45 = vld [vmem:[#allocation11 + $0x80] ss:$28 sps:$4 sm:$0xff]  }
 0x3cc   :  { %v3707_v46 = vld [vmem:[#allocation11 + $0x88] ss:$28 sps:$4 sm:$0xff]  }
 0x3ce   :  { %2649 = vmatpush1.bf16.msra.mxu0 %v3621_v48  ;;  %2731 = vmatpush1.bf16.msra.mxu1 %v3624_v49  ;;  %v3710_v48 = vld [vmem:[#allocation11 + $0xbc] ss:$28 sps:$4 sm:$0xff]  }
 0x3cf   :  { %2650 = vmatprep.subr.bf16.mxu0 %v3629_v50  ;;  %2732 = vmatprep.subr.bf16.mxu1 %v3632_v51  ;;  %v3711_v49 = vld [vmem:[#allocation11 + $0x280] ss:$28 sps:$4 sm:$0xff]   ;;  %v3708_v50 = vld [vmem:[#allocation11 + $0xb8] ss:$28 sps:$4 sm:$0xff]  }
 0x3d0   :  { %v3712_v51 = vld [vmem:[#allocation11 + $0xc0] ss:$28 sps:$4 sm:$0xff]  }
 0x3d2   :  { %2651 = vmatpush1.bf16.msra.mxu0 %v3627_v53  ;;  %2733 = vmatpush1.bf16.msra.mxu1 %v3630_v56  ;;  %v3715_v53 = vld [vmem:[#allocation11 + $0xf4] ss:$28 sps:$4 sm:$0xff]  }
 0x3d3   :  { %2652 = vmatprep.subr.bf16.mxu0 %v3635_v57  ;;  %2734 = vmatprep.subr.bf16.mxu1 %v3638_v58  ;;  %v3713_v56 = vld [vmem:[#allocation11 + $0xf0] ss:$28 sps:$4 sm:$0xff]   ;;  %v3717_v57 = vld [vmem:[#allocation11 + $0xf8] ss:$28 sps:$4 sm:$0xff]  }
 0x3d4   :  { %v3720_v58 = vld [vmem:[#allocation11 + $0x12c] ss:$28 sps:$4 sm:$0xff]  }
 0x3d6   :  { %2653 = vmatpush1.bf16.msra.mxu0 %v3633_v59  ;;  %2735 = vmatpush1.bf16.msra.mxu1 %v3636_v60  ;;  %v3721_v59 = vld [vmem:[#allocation11 + $0x2f0] ss:$28 sps:$4 sm:$0xff]   ;;  %v3718_v60 = vld [vmem:[#allocation11 + $0x128] ss:$28 sps:$4 sm:$0xff]  }
 0x3d7   :  { %2654 = vmatprep.subr.bf16.mxu0 %v3641_v61  ;;  %2736 = vmatprep.subr.bf16.mxu1 %v3644_v62  ;;  %v3722_v61 = vld [vmem:[#allocation11 + $0x130] ss:$28 sps:$4 sm:$0xff]   ;;  %v3725_v62 = vld [vmem:[#allocation11 + $0x164] ss:$28 sps:$4 sm:$0xff]  }
 0x3da   :  { %2655 = vmatpush1.bf16.msra.mxu0 %v3639_v63  ;;  %2737 = vmatpush1.bf16.msra.mxu1 %v3642_v0  ;;  %v3726_v63 = vld [vmem:[#allocation11 + $0x328] ss:$28 sps:$4 sm:$0xff]   ;;  %v3723_v0 = vld [vmem:[#allocation11 + $0x160] ss:$28 sps:$4 sm:$0xff]  }
 0x3db   :  { %2656 = vmatprep.subr.bf16.mxu0 %v3647_v1  ;;  %2738 = vmatprep.subr.bf16.mxu1 %v3650_v2  ;;  %v3727_v1 = vld [vmem:[#allocation11 + $0x168] ss:$28 sps:$4 sm:$0xff]   ;;  %v3730_v2 = vld [vmem:[#allocation11 + $0x19c] ss:$28 sps:$4 sm:$0xff]  }
 0x3de   :  { %2657 = vmatpush1.bf16.msra.mxu0 %v3645_v4  ;;  %2739 = vmatpush1.bf16.msra.mxu1 %v3648_v5  ;;  %v3731_v4 = vld [vmem:[#allocation11 + $0x360] ss:$28 sps:$4 sm:$0xff]   ;;  %v3728_v5 = vld [vmem:[#allocation11 + $0x198] ss:$28 sps:$4 sm:$0xff]  }
 0x3df   :  { %2658 = vmatprep.subr.bf16.mxu0 %v3653_v7  ;;  %2740 = vmatprep.subr.bf16.mxu1 %v3656_v8  ;;  %v3732_v7 = vld [vmem:[#allocation11 + $0x1a0] ss:$28 sps:$4 sm:$0xff]   ;;  %v3735_v8 = vld [vmem:[#allocation11 + $0x1d4] ss:$28 sps:$4 sm:$0xff]  }
 0x3e2   :  { %2659 = vmatpush1.bf16.msra.mxu0 %v3651_v9  ;;  %2741 = vmatpush1.bf16.msra.mxu1 %v3654_v10  ;;  %v3736_v9 = vld [vmem:[#allocation11 + $0x558] ss:$28 sps:$4 sm:$0xff]   ;;  %v3733_v10 = vld [vmem:[#allocation11 + $0x1d0] ss:$28 sps:$4 sm:$0xff]  }
 0x3e3   :  { %2660 = vmatprep.subr.bf16.mxu0 %v3659_v3  ;;  %2742 = vmatprep.subr.bf16.mxu1 %v3662_v52  ;;  %v3737_v3 = vld [vmem:[#allocation11 + $0x398] ss:$28 sps:$4 sm:$0xff]   ;;  %v3740_v52 = vld [vmem:[#allocation11 + $0x20c] ss:$28 sps:$4 sm:$0xff]  }
 0x3e6   :  { %2661 = vmatpush1.bf16.msra.mxu0 %v3657_v6  ;;  %2743 = vmatpush1.bf16.msra.mxu1 %v3660_v11  ;;  %v3741_v6 = vld [vmem:[#allocation11 + $0x590] ss:$28 sps:$4 sm:$0xff]   ;;  %v3738_v11 = vld [vmem:[#allocation11 + $0x208] ss:$28 sps:$4 sm:$0xff]  }
 0x3e7   :  { %2662 = vmatprep.subr.bf16.mxu0 %v3665_v12  ;;  %2744 = vmatprep.subr.bf16.mxu1 %v3668_v13  ;;  %v3742_v12 = vld [vmem:[#allocation11 + $0x3d0] ss:$28 sps:$4 sm:$0xff]   ;;  %v3745_v13 = vld [vmem:[#allocation11 + $0x244] ss:$28 sps:$4 sm:$0xff]  }
 0x3ea   :  { %2663 = vmatpush1.bf16.msra.mxu0 %v3663_v14  ;;  %2745 = vmatpush1.bf16.msra.mxu1 %v3666_v15  ;;  %v3746_v14 = vld [vmem:[#allocation11 + $0x5c8] ss:$28 sps:$4 sm:$0xff]   ;;  %v3743_v15 = vld [vmem:[#allocation11 + $0x240] ss:$28 sps:$4 sm:$0xff]  }
 0x3eb   :  { %2664 = vmatprep.subr.bf16.mxu0 %v3671_v27  ;;  %2746 = vmatprep.subr.bf16.mxu1 %v3674_v16  ;;  %v3747_v27 = vld [vmem:[#allocation11 + $0x408] ss:$28 sps:$4 sm:$0xff]   ;;  %v3750_v16 = vld [vmem:[#allocation11 + $0x27c] ss:$28 sps:$4 sm:$0xff]  }
 0x3ee   :  { %2665 = vmatpush1.bf16.msra.mxu0 %v3669_v26  ;;  %2747 = vmatpush1.bf16.msra.mxu1 %v3672_v20  ;;  %v3751_v26 = vld [vmem:[#allocation11 + $0x600] ss:$28 sps:$4 sm:$0xff]   ;;  %v3748_v20 = vld [vmem:[#allocation11 + $0x278] ss:$28 sps:$4 sm:$0xff]  }
 0x3ef   :  { %2666 = vmatprep.subr.bf16.mxu0 %v3677_v21  ;;  %2748 = vmatprep.subr.bf16.mxu1 %v3680_v17  ;;  %v3752_v21 = vld [vmem:[#allocation11 + $0x440] ss:$28 sps:$4 sm:$0xff]   ;;  %v3755_v17 = vld [vmem:[#allocation11 + $0x2b4] ss:$28 sps:$4 sm:$0xff]  }
 0x3f2   :  { %2667 = vmatpush1.bf16.msra.mxu0 %v3675_v18  ;;  %2749 = vmatpush1.bf16.msra.mxu1 %v3678_v19  ;;  %v3756_v18 = vld [vmem:[#allocation11 + $0x638] ss:$28 sps:$4 sm:$0xff]   ;;  %v3753_v19 = vld [vmem:[#allocation11 + $0x2b0] ss:$28 sps:$4 sm:$0xff]  }
 0x3f3   :  { %2668 = vmatprep.subr.bf16.mxu0 %v3683_v23  ;;  %2750 = vmatprep.subr.bf16.mxu1 %v3686_v24  ;;  %v3757_v23 = vld [vmem:[#allocation11 + $0x478] ss:$28 sps:$4 sm:$0xff]   ;;  %v3760_v24 = vld [vmem:[#allocation11 + $0x2ec] ss:$28 sps:$4 sm:$0xff]  }
 0x3f6   :  { %2669 = vmatpush1.bf16.msra.mxu0 %v3681_v25  ;;  %2751 = vmatpush1.bf16.msra.mxu1 %v3684_v28  ;;  %v3761_v25 = vld [vmem:[#allocation11 + $0x670] ss:$28 sps:$4 sm:$0xff]   ;;  %v3758_v28 = vld [vmem:[#allocation11 + $0x2e8] ss:$28 sps:$4 sm:$0xff]  }
 0x3f7   :  { %2670 = vmatprep.subr.bf16.mxu0 %v3689_v47  ;;  %2752 = vmatprep.subr.bf16.mxu1 %v3692_v30  ;;  %v3762_v47 = vld [vmem:[#allocation11 + $0x4b0] ss:$28 sps:$4 sm:$0xff]   ;;  %v3765_v30 = vld [vmem:[#allocation11 + $0x324] ss:$28 sps:$4 sm:$0xff]  }
 0x3fa   :  { %2671 = vmatpush1.bf16.msra.mxu0 %v3687_v54  ;;  %2753 = vmatpush1.bf16.msra.mxu1 %v3690_v32  ;;  %v3763_v54 = vld [vmem:[#allocation11 + $0x320] ss:$28 sps:$4 sm:$0xff]   ;;  %v3767_v32 = vld [vmem:[#allocation11 + $0x4e8] ss:$28 sps:$4 sm:$0xff]  }
 0x3fb   :  { %2763 = vmatprep.subr.bf16.mxu0 %v3695_v33  ;;  %3278 = vmatprep.subr.bf16.mxu1 %v3696_v35  ;;  %v3770_v33 = vld [vmem:[#allocation11 + $0x35c] ss:$28 sps:$4 sm:$0xff]  }
 0x3fc   :  { %v3771_v35 = vld [vmem:[#allocation11 + $0x6e0] ss:$28 sps:$4 sm:$0xff]  }
 0x3fd   :  { %2673 = vmatmul.mubr.bf16.vlgmr.msra.gmra.mrb[4].mxu0 %v4257_v38  ;;  %2755 = vmatmul.mubr.bf16.vlgmr.msra.gmra.mrb[12].mxu1 %v4257_v38 }
 0x3fe   :  { %2764 = vmatpush1.bf16.msra.mxu0 %v3693_v37  ;;  %2795 = vmatprep.mubr.bf16.mxu0 %v4242_v29  ;;  %v3772_v37 = vld [vmem:[#allocation11 + $0x520] ss:$28 sps:$4 sm:$0xff]  }
 0x3ff   :  { %3279 = vmatpush3.bf16.msra.mxu1 %v3697_v39  ;;  %2877 = vmatprep.mubr.bf16.mxu1 %v4242_v29  ;;  %v3716_v29 = vld [vmem:[#allocation11 + $0x2b8] ss:$28 sps:$4 sm:$0xff]  }
 0x400   :  { %2765 = vmatprep.subr.bf16.mxu0 %v3700_v40  ;;  %3280 = vmatprep.subr.bf16.mxu1 %v3701_v41  ;;  %v3775_v39 = vld [vmem:[#allocation11 + $0x394] ss:$28 sps:$4 sm:$0xff]   ;;  %v3778_v41 = vld [vmem:[#allocation11 + $0x3cc] ss:$28 sps:$4 sm:$0xff]  }
 0x401   :  { %v3773_v40 = vld [vmem:[#allocation11 + $0x390] ss:$28 sps:$4 sm:$0xff]  }
 0x402   :  { %2766 = vmatpush1.bf16.msra.mxu0 %v3698_v42  ;;  %v3776_v42 = vld [vmem:[#allocation11 + $0x3c8] ss:$28 sps:$4 sm:$0xff]  }
 0x403   :  { %3281 = vmatpush3.bf16.msra.mxu1 %v3702_v22  ;;  %2767 = vmatprep.subr.bf16.mxu0 %v3705_v43  ;;  %v3781_v22 = vld [vmem:[#allocation11 + $0x404] ss:$28 sps:$4 sm:$0xff]  }
 0x404   :  { %3282 = vmatprep.subr.bf16.mxu1 %v3706_v44  ;;  %v3779_v43 = vld [vmem:[#allocation11 + $0x400] ss:$28 sps:$4 sm:$0xff]  }
 0x405   :  { %v3784_v44 = vld [vmem:[#allocation11 + $0x43c] ss:$28 sps:$4 sm:$0xff]  }
 0x406   :  { %2768 = vmatpush1.bf16.msra.mxu0 %v3703_v45  ;;  %v3782_v45 = vld [vmem:[#allocation11 + $0x438] ss:$28 sps:$4 sm:$0xff]  }
 0x407   :  { %3283 = vmatpush3.bf16.msra.mxu1 %v3707_v46  ;;  %2769 = vmatprep.subr.bf16.mxu0 %v3710_v48  ;;  %v3787_v46 = vld [vmem:[#allocation11 + $0x474] ss:$28 sps:$4 sm:$0xff]  }
 0x408   :  { %3284 = vmatprep.subr.bf16.mxu1 %v3711_v49  ;;  %v3785_v48 = vld [vmem:[#allocation11 + $0x470] ss:$28 sps:$4 sm:$0xff]   ;;  %v3788_v49 = vld [vmem:[#allocation11 + $0x4a8] ss:$28 sps:$4 sm:$0xff]  }
 0x40a   :  { %2770 = vmatpush1.bf16.msra.mxu0 %v3708_v50  ;;  %v3793_v50 = vld [vmem:[#allocation11 + $0x4e4] ss:$28 sps:$4 sm:$0xff]  }
 0x40b   :  { %3285 = vmatpush3.bf16.msra.mxu1 %v3712_v51  ;;  %2771 = vmatprep.subr.bf16.mxu0 %v3715_v53  ;;  %v3796_v51 = vld [vmem:[#allocation11 + $0x51c] ss:$28 sps:$4 sm:$0xff]  }
 0x40c   :  { %3286 = vmatprep.subr.bf16.mxu1 %v3716_v29  ;;  %v3794_v53 = vld [vmem:[#allocation11 + $0x518] ss:$28 sps:$4 sm:$0xff]  }
 0x40d   :  { %v3799_v29 = vld [vmem:[#allocation11 + $0x554] ss:$28 sps:$4 sm:$0xff]  }
 0x40e   :  { %2772 = vmatpush1.bf16.msra.mxu0 %v3713_v56  ;;  %v3797_v56 = vld [vmem:[#allocation11 + $0x550] ss:$28 sps:$4 sm:$0xff]  }
 0x40f   :  { %3287 = vmatpush3.bf16.msra.mxu1 %v3717_v57  ;;  %2773 = vmatprep.subr.bf16.mxu0 %v3720_v58  ;;  %v3802_v57 = vld [vmem:[#allocation11 + $0x58c] ss:$28 sps:$4 sm:$0xff]  }
 0x410   :  { %3288 = vmatprep.subr.bf16.mxu1 %v3721_v59  ;;  %v3800_v58 = vld [vmem:[#allocation11 + $0x588] ss:$28 sps:$4 sm:$0xff]  }
 0x411   :  { %v3805_v59 = vld [vmem:[#allocation11 + $0x5c4] ss:$28 sps:$4 sm:$0xff]  }
 0x412   :  { %2774 = vmatpush1.bf16.msra.mxu0 %v3718_v60  ;;  %v3803_v60 = vld [vmem:[#allocation11 + $0x5c0] ss:$28 sps:$4 sm:$0xff]  }
 0x413   :  { %3289 = vmatpush3.bf16.msra.mxu1 %v3722_v61  ;;  %2775 = vmatprep.subr.bf16.mxu0 %v3725_v62  ;;  %v3808_v61 = vld [vmem:[#allocation11 + $0x5fc] ss:$28 sps:$4 sm:$0xff]  }
 0x414   :  { %3290 = vmatprep.subr.bf16.mxu1 %v3726_v63  ;;  %v3806_v62 = vld [vmem:[#allocation11 + $0x5f8] ss:$28 sps:$4 sm:$0xff]  }
 0x415   :  { %v3811_v63 = vld [vmem:[#allocation11 + $0x634] ss:$28 sps:$4 sm:$0xff]  }
 0x416   :  { %2776 = vmatpush1.bf16.msra.mxu0 %v3723_v0  ;;  %v3809_v0 = vld [vmem:[#allocation11 + $0x630] ss:$28 sps:$4 sm:$0xff]  }
 0x417   :  { %3291 = vmatpush3.bf16.msra.mxu1 %v3727_v1  ;;  %2777 = vmatprep.subr.bf16.mxu0 %v3730_v2  ;;  %v3814_v1 = vld [vmem:[#allocation11 + $0x66c] ss:$28 sps:$4 sm:$0xff]  }
 0x418   :  { %3292 = vmatprep.subr.bf16.mxu1 %v3731_v4  ;;  %v3812_v2 = vld [vmem:[#allocation11 + $0x668] ss:$28 sps:$4 sm:$0xff]  }
 0x419   :  { %v3817_v4 = vld [vmem:[#allocation11 + $0x6a4] ss:$28 sps:$4 sm:$0xff]  }
 0x41a   :  { %2778 = vmatpush1.bf16.msra.mxu0 %v3728_v5  ;;  %v3815_v5 = vld [vmem:[#allocation11 + $0x6a0] ss:$28 sps:$4 sm:$0xff]  }
 0x41b   :  { %3293 = vmatpush3.bf16.msra.mxu1 %v3732_v7  ;;  %2779 = vmatprep.subr.bf16.mxu0 %v3735_v8  ;;  %v3820_v7 = vld [vmem:[#allocation11 + $0x6dc] ss:$28 sps:$4 sm:$0xff]  }
 0x41c   :  { %3300 = vmatprep.subr.bf16.mxu1 %v3736_v9  ;;  %v3818_v8 = vld [vmem:[#allocation11 + $0x6d8] ss:$28 sps:$4 sm:$0xff]  }
 0x41e   :  { %2878 = vmatmul.mubr.bf16.vlgmr.msra.gmra.mrb[16].mxu1 %v4244_v31  ;;  %2780 = vmatpush1.bf16.msra.mxu0 %v3733_v10 }
 0x41f   :  { %3301 = vmatpush3.bf16.msra.mxu1 %v3737_v3  ;;  %2917 = vmatprep.mubr.bf16.mxu1 %v4250_v34 }
 0x420   :  { %2781 = vmatprep.subr.bf16.mxu0 %v3740_v52  ;;  %3302 = vmatprep.subr.bf16.mxu1 %v3741_v6 }
 0x422   :  { %2782 = vmatpush1.bf16.msra.mxu0 %v3738_v11 }
 0x423   :  { %3303 = vmatpush3.bf16.msra.mxu1 %v3742_v12  ;;  %2783 = vmatprep.subr.bf16.mxu0 %v3745_v13 }
 0x424   :  { %3304 = vmatprep.subr.bf16.mxu1 %v3746_v14 }
 0x426   :  { %2784 = vmatpush1.bf16.msra.mxu0 %v3743_v15 }
 0x427   :  { %3305 = vmatpush3.bf16.msra.mxu1 %v3747_v27  ;;  %2785 = vmatprep.subr.bf16.mxu0 %v3750_v16 }
 0x428   :  { %3306 = vmatprep.subr.bf16.mxu1 %v3751_v26 }
 0x42a   :  { %2786 = vmatpush1.bf16.msra.mxu0 %v3748_v20 }
 0x42b   :  { %3307 = vmatpush3.bf16.msra.mxu1 %v3752_v21  ;;  %2787 = vmatprep.subr.bf16.mxu0 %v3755_v17 }
 0x42c   :  { %3308 = vmatprep.subr.bf16.mxu1 %v3756_v18 }
 0x42e   :  { %2788 = vmatpush1.bf16.msra.mxu0 %v3753_v19 }
 0x42f   :  { %3309 = vmatpush3.bf16.msra.mxu1 %v3757_v23  ;;  %2789 = vmatprep.subr.bf16.mxu0 %v3760_v24 }
 0x430   :  { %3310 = vmatprep.subr.bf16.mxu1 %v3761_v25 }
 0x432   :  { %2790 = vmatpush1.bf16.msra.mxu0 %v3758_v28 }
 0x433   :  { %3311 = vmatpush3.bf16.msra.mxu1 %v3762_v47  ;;  %2791 = vmatprep.subr.bf16.mxu0 %v3765_v30 }
 0x434   :  { %3312 = vmatprep.subr.bf16.mxu1 %v3766_v55 }
 0x436   :  { %2792 = vmatpush1.bf16.msra.mxu0 %v3763_v54 }
 0x437   :  { %3313 = vmatpush3.bf16.msra.mxu1 %v3767_v32  ;;  %2793 = vmatprep.subr.bf16.mxu0 %v3770_v33 }
 0x438   :  { %3314 = vmatprep.subr.bf16.mxu1 %v3771_v35 }
 0x43a   :  { %2794 = vmatpush1.bf16.msra.mxu0 %v3768_v36 }
 0x43b   :  { %3315 = vmatpush3.bf16.msra.mxu1 %v3772_v37  ;;  %2804 = vmatprep.subr.bf16.mxu0 %v3775_v39 }
 0x43d   :  { %2796 = vmatmul.mubr.bf16.vlgmr.msra.gmra.mrb[8].mxu0 %v4244_v31  ;;  %v3790_v31 = vld [vmem:[#allocation11 + $0x4ac] ss:$28 sps:$4 sm:$0xff]  }
 0x43e   :  { %2918 = vmatmul.mubr.bf16.vlgmr.msra.gmra.mrb[20].mxu1 %v4257_v38  ;;  %2805 = vmatpush1.bf16.msra.mxu0 %v3773_v40 }
 0x43f   :  { %2836 = vmatprep.mubr.bf16.mxu0 %v4250_v34  ;;  %2806 = vmatprep.subr.bf16.mxu0 %v3778_v41  ;;  %v3791_v34 = vld [vmem:[#allocation11 + $0x4e0] ss:$28 sps:$4 sm:$0xff]  }
 0x442   :  { %2807 = vmatpush1.bf16.msra.mxu0 %v3776_v42 }
 0x443   :  { %2808 = vmatprep.subr.bf16.mxu0 %v3781_v22 }
 0x446   :  { %2809 = vmatpush1.bf16.msra.mxu0 %v3779_v43 }
 0x447   :  { %2810 = vmatprep.subr.bf16.mxu0 %v3784_v44 }
 0x44a   :  { %2811 = vmatpush1.bf16.msra.mxu0 %v3782_v45 }
 0x44b   :  { %2812 = vmatprep.subr.bf16.mxu0 %v3787_v46 }
 0x44e   :  { %2813 = vmatpush1.bf16.msra.mxu0 %v3785_v48 }
 0x44f   :  { %2814 = vmatprep.subr.bf16.mxu0 %v3790_v31 }
 0x452   :  { %2815 = vmatpush1.bf16.msra.mxu0 %v3788_v49 }
 0x453   :  { %2816 = vmatprep.subr.bf16.mxu0 %v3793_v50 }
 0x456   :  { %2817 = vmatpush1.bf16.msra.mxu0 %v3791_v34 }
 0x457   :  { %2818 = vmatprep.subr.bf16.mxu0 %v3796_v51 }
 0x45a   :  { %2819 = vmatpush1.bf16.msra.mxu0 %v3794_v53 }
 0x45b   :  { %2820 = vmatprep.subr.bf16.mxu0 %v3799_v29 }
 0x45e   :  { %2821 = vmatpush1.bf16.msra.mxu0 %v3797_v56 }
 0x45f   :  { %2822 = vmatprep.subr.bf16.mxu0 %v3802_v57 }
 0x462   :  { %2823 = vmatpush1.bf16.msra.mxu0 %v3800_v58 }
 0x463   :  { %2824 = vmatprep.subr.bf16.mxu0 %v3805_v59 }
 0x466   :  { %2825 = vmatpush1.bf16.msra.mxu0 %v3803_v60 }
 0x467   :  { %2826 = vmatprep.subr.bf16.mxu0 %v3808_v61 }
 0x46a   :  { %2827 = vmatpush1.bf16.msra.mxu0 %v3806_v62 }
 0x46b   :  { %2828 = vmatprep.subr.bf16.mxu0 %v3811_v63 }
 0x46e   :  { %2829 = vmatpush1.bf16.msra.mxu0 %v3809_v0 }
 0x46f   :  { %2830 = vmatprep.subr.bf16.mxu0 %v3814_v1 }
 0x472   :  { %2831 = vmatpush1.bf16.msra.mxu0 %v3812_v2 }
 0x473   :  { %2832 = vmatprep.subr.bf16.mxu0 %v3817_v4 }
 0x476   :  { %2833 = vmatpush1.bf16.msra.mxu0 %v3815_v5 }
 0x477   :  { %2834 = vmatprep.subr.bf16.mxu0 %v3820_v7 }
 0x47a   :  { %2835 = vmatpush1.bf16.msra.mxu0 %v3818_v8 }
 0x47d   :  { %2837 = vmatmul.mubr.bf16.vlgmr.msra.gmra.mrb[8].mxu0 %v4257_v38 }
 0x4d0   :  { %v2674_v9 = vpop.f32.mrb[4].mxu0  ;;  %v2756_v10 = vpop.f32.mrb[12].mxu1 }
 0x4d1   :  { %3835 = vtanh.f32 %v2674_v9  ;;  %v2676_v3 = vpop.f32.mrb[5].mxu0  ;;  %v2758_v52 = vpop.f32.mrb[13].mxu1 }
 0x4d2   :  { %3837 = vtanh.f32 %v2756_v10  ;;  %v2678_v6 = vpop.f32.mrb[6].mxu0  ;;  %v2760_v11 = vpop.f32.mrb[14].mxu1 }
 0x4d3   :  { %3839 = vtanh.f32 %v2676_v3  ;;  %v2679_v12 = vpop.f32.mrb[7].mxu0  ;;  %v2761_v13 = vpop.f32.mrb[15].mxu1 }
 0x4d4   :  { %3841 = vtanh.f32 %v2758_v52 }
 0x4db   :  { %v3836_v14 = vpop.eup %3835 }
 0x4dc   :  { %v3838_v15 = vpop.eup %3837  ;;  %2932 = vst [vmem:[#allocation13] sm:$0xff] %v3836_v14 }
 0x4dd   :  { %v3840_v27 = vpop.eup %3839  ;;  %2934 = vst [vmem:[#allocation13 + $0x10] sm:$0xff] %v3838_v15 }
 0x4de   :  { %v3842_v16 = vpop.eup %3841  ;;  %2933 = vst [vmem:[#allocation13 + $0x8] sm:$0xff] %v3840_v27 }
 0x4df   :  { %2935 = vst [vmem:[#allocation13 + $0x18] sm:$0xff] %v3842_v16 }
 0x4f1   :  { %v3294_v38 = vpop.f32.mrb[16].mxu1 }
 0x4f2   :  { %v3295_v26 = vpop.f32.mrb[17].mxu1 }
 0x4f3   :  { %v3296_v20 = vadd.f32 %v3295_v26, %v3294_v38  ;;  %v3297_v21 = vpop.f32.mrb[18].mxu1 }
 0x4f4   :  { %v3298_v17 = vpop.f32.mrb[19].mxu1 }
 0x511   :  { %v3316_v18 = vpop.f32.mrb[20].mxu1 }
 0x512   :  { %v3317_v19 = vpop.f32.mrb[21].mxu1 }
 0x513   :  { %v3318_v23 = vadd.f32 %v3317_v19, %v3316_v18  ;;  %v3319_v24 = vpop.f32.mrb[22].mxu1 }
 0x514   :  { %v3320_v25 = vpop.f32.mrb[23].mxu1 }
 0x515   :  { %v2920_v28 = vadd.f32 %v3318_v23, %v3296_v20 }
 0x517   :  { %3843 = vtanh.f32 %v2920_v28 }
 0x521   :  { %v3844_v47 = vpop.eup %3843 }
 0x522   :  { %2938 = vst [vmem:[#allocation13 + $0x30] sm:$0xff] %v3844_v47 }
 0x550   :  { %v2838_v30 = vpop.f32.mrb[8].mxu0 }
 0x551   :  { %3845 = vtanh.f32 %v2838_v30  ;;  %v2840_v55 = vpop.f32.mrb[9].mxu0 }
 0x552   :  { %3847 = vtanh.f32 %v2840_v55  ;;  %v2842_v54 = vpop.f32.mrb[10].mxu0 }
 0x553   :  { %v2843_v32 = vpop.f32.mrb[11].mxu0 }
 0x55b   :  { %v3846_v33 = vpop.eup %3845 }
 0x55c   :  { %v3848_v35 = vpop.eup %3847  ;;  %2936 = vst [vmem:[#allocation13 + $0x20] sm:$0xff] %v3846_v33 }
 0x55d   :  { %2937 = vst [vmem:[#allocation13 + $0x28] sm:$0xff] %v3848_v35 }
 0x55e   :  { %3992 = shalt.err (!%p3989_p10)
}
 0x55f   :  { %s3993_s21 = scalar_lea.hbm %s4292_s11, 896 }
 0x560   :  { %p3994_p11 = scmp.ne.s32.totalorder %s4292_s11, %s3993_s21  ;;  %p3997_p12 = scmp.lt.u32.totalorder %s3993_s21, %s4292_s11 }
 0x562   :  { %p3999_p13 = pnand %p3997_p12, %p3994_p11 }
 0x564   :  { %4002 = shalt.err (!%p3999_p13)
}
 0x565   :  { %2948 = dma.vmem_to_hbm [thread:$0]  %s2946_s19, 896, %s4292_s11, [#allocation4]  }
 0x566   :  { %4011 = dma.done.wait [#allocation4], 896  }
 0x567   :  { %4012 = vsyncadd [#allocation4], 4294966400 }
 0x568   :  { %2952 = vsyncpa [#allocation3], 1 }
 0x569   :  { %2953 = vsyncpa [#allocation6], 1 }
 0x56a   :  { %2954 = vsyncpa [#allocation9], 1 }
 0x56b   :  { %2955 = vsyncpa [#allocation12], 1 }
 0x56c   :  { %2956 = vsyncpa [#allocation4], 1 }

</bundles_post_ra>
